<compile_context>
chip_gen: v7x
topology: tpu7x:2x2x1
jax: 0.10.0
libtpu: 0.0.40
codegen_flags: <defaults>
</compile_context>

<pallas_src>
import functools

import jax
import jax.numpy as jnp
from jax.experimental import pallas as pl
from jax.experimental.pallas import tpu as pltpu


def att_pooling_kernel(feat_ref, w1bd_ref, wagg_ref, scale_ref, shift_ref,
                       out_ref, *, c_in):
    # feat_ref  : (1, TN, F)     F = K * C_in, fused neighbors*channels (lane dim), f32
    # w1bd_ref  : (F, F)         block-diagonal attention weight (K copies of w1^T), bf16
    # wagg_ref  : (F, C_out)     fused neighbor-sum + mlp weight (K copies of w2^T), f32
    # scale/shift : (1, C_out)   folded BatchNorm, f32
    # out_ref   : (1, TN, C_out)
    x = feat_ref[0]                                           # (TN, F) f32
    f_dim = x.shape[-1]

    # Attention activation: block-diagonal 1x1 conv as one dense bf16 MXU matmul
    # (128-deep contraction, single pass on bf16-native MXUs), f32 accumulate.
    att = jnp.dot(x.astype(jnp.bfloat16), w1bd_ref[...],
                  preferred_element_type=jnp.float32)         # (TN, F)

    # Softmax over the K neighbors of each (point, channel), entirely in-lane.
    # Max tree: log2(K) circular lane rolls with stride C_in (XLU slot).
    m = att
    sh = c_in
    while sh < f_dim:
        m = jnp.maximum(m, pltpu.roll(m, shift=sh, axis=1))
        sh *= 2

    e = jnp.exp(att - m)                                      # (TN, F) unnormalized

    # Denominator via the same roll tree (roll+add): sum_k exp replicated across
    # the K lane-groups. Replaces the old (TN,F)x(F,C_in) MXU matmul.
    denom = e
    sh = c_in
    while sh < f_dim:
        denom = denom + pltpu.roll(denom, shift=sh, axis=1)
        sh *= 2

    # Normalize in place (EUP approximate reciprocal).
    scores = e * pl.reciprocal(denom, approx=True)            # (TN, F)

    # Fused softmax-weighted aggregation + mlp (C_in -> C_out): one MXU matmul.
    # Kept f32: feature aggregation is the precision-sensitive path.
    y = jnp.dot(x * scores, wagg_ref[...],
                preferred_element_type=jnp.float32)           # (TN, C_out)

    # Folded BatchNorm + ReLU.
    y = y * scale_ref[...] + shift_ref[...]
    out_ref[0] = jnp.maximum(y, 0.0).astype(out_ref.dtype)


def _round_up(x, m):
    return (x + m - 1) // m * m


def att_pooling(feat, w1, w2, bn_gamma, bn_beta, bn_mean, bn_var,
                *, eps=1e-5, tile_n=512):
    """feat: (B, N, K, C_in) channels-last. Returns (B, N, C_out)."""
    B, N, K, C_in = feat.shape
    C_out = w2.shape[0]
    F = K * C_in
    assert K & (K - 1) == 0, "K must be a power of two (roll-tree reduction over K)"
    dt = feat.dtype

    # Fuse (K, C_in) into the lane dimension — free row-major reshape.
    feat_f = feat.reshape(B, N, F)

    # Tile over points: clamp to (padded) N, multiple of 8 sublanes, zero-pad tail
    # (padded rows yield finite values that are sliced off afterwards).
    tile_n = int(max(8, min(tile_n, _round_up(N, 8))))
    tile_n = _round_up(tile_n, 8)
    n_pad = _round_up(N, tile_n)
    if n_pad != N:
        feat_f = jnp.pad(feat_f, ((0, 0), (0, n_pad - N), (0, 0)))

    # fc conv weight (C_in, C_in, 1, 1):  att[., k*C+d] = sum_c x[., k*C+c] * w1[d, c]
    # -> block-diagonal (F, F) matrix with w1^T blocks; shipped bf16 for the MXU.
    w1m = w1.reshape(C_in, C_in).astype(jnp.float32)
    w1bd = jnp.kron(jnp.eye(K, dtype=jnp.float32),
                    jnp.transpose(w1m)).astype(jnp.bfloat16)                  # (F, F)

    # Fused neighbor-sum + mlp weight: W_agg[k*C+c, d] = w2[d, c]  (== ssum @ w2^T).
    w2t = jnp.transpose(w2.reshape(C_out, C_in)).astype(jnp.float32)          # (C_in, C_out)
    wagg = jnp.tile(w2t, (K, 1))                                              # (F, C_out)

    # Fold BatchNorm (inference form) into scale / shift.
    inv_std = 1.0 / jnp.sqrt(bn_var.astype(jnp.float32) + eps)
    scale = (bn_gamma * inv_std).reshape(1, C_out).astype(jnp.float32)
    shift = (bn_beta - bn_gamma * bn_mean * inv_std).reshape(1, C_out).astype(jnp.float32)

    grid = (B, n_pad // tile_n)
    kernel = functools.partial(att_pooling_kernel, c_in=C_in)
    out = pl.pallas_call(
        kernel,
        out_shape=jax.ShapeDtypeStruct((B, n_pad, C_out), dt),
        grid_spec=pltpu.PrefetchScalarGridSpec(
            num_scalar_prefetch=0,
            grid=grid,
            in_specs=[
                pl.BlockSpec((1, tile_n, F), lambda b, i: (b, i, 0)),
                pl.BlockSpec((F, F), lambda b, i: (0, 0)),
                pl.BlockSpec((F, C_out), lambda b, i: (0, 0)),
                pl.BlockSpec((1, C_out), lambda b, i: (0, 0)),
                pl.BlockSpec((1, C_out), lambda b, i: (0, 0)),
            ],
            out_specs=pl.BlockSpec((1, tile_n, C_out), lambda b, i: (b, i, 0)),
        ),
        compiler_params=pltpu.CompilerParams(
            dimension_semantics=("parallel", "parallel")),
    )(feat_f, w1bd, wagg, scale, shift)

    return out[:, :N, :] if n_pad != N else out


def att_pooling_ref(feat, w1, w2, bn_gamma, bn_beta, bn_mean, bn_var, eps=1e-5):
    """Plain-JAX reference mirroring the PyTorch forward (channels-last)."""
    B, N, K, C_in = feat.shape
    C_out = w2.shape[0]
    att = jnp.einsum("bnkc,dc->bnkd", feat, w1.reshape(C_in, C_in))
    scores = jax.nn.softmax(att, axis=2)                      # over K
    agg = jnp.sum(feat * scores, axis=2)                      # (B, N, C_in)
    y = jnp.einsum("bnc,dc->bnd", agg, w2.reshape(C_out, C_in))
    y = (y - bn_mean) / jnp.sqrt(bn_var + eps) * bn_gamma + bn_beta
    return jnp.maximum(y, 0.0)


if __name__ == "__main__":
    key = jax.random.PRNGKey(0)
    B, N, K, d_in, d_out = 2, 256, 16, 8, 16    # K*d_in = 128 -> lane-dense fused dim

    k0, k1, k2, k3, k4, k5, k6 = jax.random.split(key, 7)
    feat = jax.random.normal(k0, (B, N, K, d_in), dtype=jnp.float32)

    # Deterministic parameter init (synthetic; not loaded from a checkpoint)
    w1 = 0.1 * jax.random.normal(k1, (d_in, d_in, 1, 1), dtype=jnp.float32)
    w2 = 0.1 * jax.random.normal(k2, (d_out, d_in, 1, 1), dtype=jnp.float32)
    bn_gamma = 1.0 + 0.05 * jax.random.normal(k3, (d_out,), dtype=jnp.float32)
    bn_beta = 0.05 * jax.random.normal(k4, (d_out,), dtype=jnp.float32)
    bn_mean = 0.05 * jax.random.normal(k5, (d_out,), dtype=jnp.float32)
    bn_var = jnp.abs(1.0 + 0.05 * jax.random.normal(k6, (d_out,), dtype=jnp.float32))

    out = att_pooling(feat, w1, w2, bn_gamma, bn_beta, bn_mean, bn_var)
    out = jax.block_until_ready(out)

    ref = att_pooling_ref(feat, w1, w2, bn_gamma, bn_beta, bn_mean, bn_var)
    assert out.shape == (B, N, d_out)
    # Tolerance 2e-3: bf16 attention logits + EUP approximate reciprocal on the
    # softmax denominator; the aggregation/mlp path stays in f32.
    assert jnp.allclose(out, ref, atol=2e-3, rtol=2e-3), float(jnp.max(jnp.abs(out - ref)))

    print("KERNEL_OK")
</pallas_src>

<mosaic_0001>
module attributes {stable_mosaic.version = 11 : i64} {
  func.func @att_pooling_kernel(%arg0: i32, %arg1: i32, %arg2: memref<1x256x128xf32, #tpu.memory_space<vmem>>, %arg3: memref<128x128xbf16, #tpu.memory_space<vmem>>, %arg4: memref<128x16xf32, #tpu.memory_space<vmem>>, %arg5: memref<1x16xf32, #tpu.memory_space<vmem>>, %arg6: memref<1x16xf32, #tpu.memory_space<vmem>>, %arg7: memref<1x256x16xf32, #tpu.memory_space<vmem>>) attributes {dimension_semantics = [#tpu.dimension_semantics<parallel>, #tpu.dimension_semantics<parallel>], iteration_bounds = array<i64: 2, 1>, scalar_prefetch = 0 : i64, scratch_operands = 0 : i64, tpu.core_type = #tpu.core_type<tc>, window_params = [{transform_indices = @transform_0, window_bounds = array<i64: 1, 256, 128>}, {pipeline_mode = #tpu.pipeline_mode<synchronous>, transform_indices = @transform_1, window_bounds = array<i64: 128, 128>}, {pipeline_mode = #tpu.pipeline_mode<synchronous>, transform_indices = @transform_2, window_bounds = array<i64: 128, 16>}, {pipeline_mode = #tpu.pipeline_mode<synchronous>, transform_indices = @transform_3, window_bounds = array<i64: 1, 16>}, {pipeline_mode = #tpu.pipeline_mode<synchronous>, transform_indices = @transform_4, window_bounds = array<i64: 1, 16>}, {transform_indices = @transform_5, window_bounds = array<i64: 1, 256, 16>}]} {
    %c0 = arith.constant 0 : index
    %c0_0 = arith.constant 0 : index
    %c0_1 = arith.constant 0 : index
    %0 = vector.load %arg2[%c0, %c0_0, %c0_1] : memref<1x256x128xf32, #tpu.memory_space<vmem>>, vector<1x256x128xf32>
    %1 = vector.shape_cast %0 : vector<1x256x128xf32> to vector<256x128xf32>
    %2 = arith.truncf %1 : vector<256x128xf32> to vector<256x128xbf16>
    %c0_2 = arith.constant 0 : index
    %c0_3 = arith.constant 0 : index
    %3 = vector.load %arg3[%c0_2, %c0_3] : memref<128x128xbf16, #tpu.memory_space<vmem>>, vector<128x128xbf16>
    %cst = arith.constant dense<0.000000e+00> : vector<256x128xf32>
    %4 = tpu.matmul %2, %3, %cst {dimension_numbers = #tpu.dot_dimension_numbers<[1], [0], [0], [1], [0, 0, 1, 1], [], []>} : vector<256x128xbf16>, vector<128x128xbf16>, vector<256x128xf32> -> vector<256x128xf32>
    %c8_i32 = arith.constant 8 : i32
    %5 = tpu.dynamic_rotate %4 by %c8_i32 dim 1 : vector<256x128xf32>, i32 -> vector<256x128xf32>
    %6 = arith.maximumf %4, %5 : vector<256x128xf32>
    %c16_i32 = arith.constant 16 : i32
    %7 = tpu.dynamic_rotate %6 by %c16_i32 dim 1 : vector<256x128xf32>, i32 -> vector<256x128xf32>
    %8 = arith.maximumf %6, %7 : vector<256x128xf32>
    %c32_i32 = arith.constant 32 : i32
    %9 = tpu.dynamic_rotate %8 by %c32_i32 dim 1 : vector<256x128xf32>, i32 -> vector<256x128xf32>
    %10 = arith.maximumf %8, %9 : vector<256x128xf32>
    %c64_i32 = arith.constant 64 : i32
    %11 = tpu.dynamic_rotate %10 by %c64_i32 dim 1 : vector<256x128xf32>, i32 -> vector<256x128xf32>
    %12 = arith.maximumf %10, %11 : vector<256x128xf32>
    %13 = arith.subf %4, %12 : vector<256x128xf32>
    %14 = math.exp %13 : vector<256x128xf32>
    %c8_i32_4 = arith.constant 8 : i32
    %15 = tpu.dynamic_rotate %14 by %c8_i32_4 dim 1 : vector<256x128xf32>, i32 -> vector<256x128xf32>
    %16 = arith.addf %14, %15 : vector<256x128xf32>
    %c16_i32_5 = arith.constant 16 : i32
    %17 = tpu.dynamic_rotate %16 by %c16_i32_5 dim 1 : vector<256x128xf32>, i32 -> vector<256x128xf32>
    %18 = arith.addf %16, %17 : vector<256x128xf32>
    %c32_i32_6 = arith.constant 32 : i32
    %19 = tpu.dynamic_rotate %18 by %c32_i32_6 dim 1 : vector<256x128xf32>, i32 -> vector<256x128xf32>
    %20 = arith.addf %18, %19 : vector<256x128xf32>
    %c64_i32_7 = arith.constant 64 : i32
    %21 = tpu.dynamic_rotate %20 by %c64_i32_7 dim 1 : vector<256x128xf32>, i32 -> vector<256x128xf32>
    %22 = arith.addf %20, %21 : vector<256x128xf32>
    %23 = tpu.reciprocal %22 {approx = true} : vector<256x128xf32> -> vector<256x128xf32>
    %24 = arith.mulf %14, %23 : vector<256x128xf32>
    %25 = arith.mulf %1, %24 : vector<256x128xf32>
    %c0_8 = arith.constant 0 : index
    %c0_9 = arith.constant 0 : index
    %26 = vector.load %arg4[%c0_8, %c0_9] : memref<128x16xf32, #tpu.memory_space<vmem>>, vector<128x16xf32>
    %cst_10 = arith.constant dense<0.000000e+00> : vector<256x16xf32>
    %27 = tpu.matmul %25, %26, %cst_10 {dimension_numbers = #tpu.dot_dimension_numbers<[1], [0], [0], [1], [0, 0, 1, 1], [], []>} : vector<256x128xf32>, vector<128x16xf32>, vector<256x16xf32> -> vector<256x16xf32>
    %c0_11 = arith.constant 0 : index
    %c0_12 = arith.constant 0 : index
    %28 = vector.load %arg5[%c0_11, %c0_12] : memref<1x16xf32, #tpu.memory_space<vmem>>, vector<1x16xf32>
    %29 = vector.broadcast %28 : vector<1x16xf32> to vector<256x16xf32>
    %30 = arith.mulf %27, %29 : vector<256x16xf32>
    %c0_13 = arith.constant 0 : index
    %c0_14 = arith.constant 0 : index
    %31 = vector.load %arg6[%c0_13, %c0_14] : memref<1x16xf32, #tpu.memory_space<vmem>>, vector<1x16xf32>
    %32 = vector.broadcast %31 : vector<1x16xf32> to vector<256x16xf32>
    %33 = arith.addf %30, %32 : vector<256x16xf32>
    %cst_15 = arith.constant 0.000000e+00 : f32
    %34 = vector.broadcast %cst_15 : f32 to vector<256x16xf32>
    %35 = arith.maximumf %33, %34 : vector<256x16xf32>
    %c0_16 = arith.constant 0 : index
    %c0_17 = arith.constant 0 : index
    %c0_18 = arith.constant 0 : index
    %36 = vector.load %arg7[%c0_16, %c0_17, %c0_18] : memref<1x256x16xf32, #tpu.memory_space<vmem>>, vector<1x256x16xf32>
    %37 = vector.shape_cast %36 : vector<1x256x16xf32> to vector<256x16xf32>
    %38 = vector.shape_cast %35 : vector<256x16xf32> to vector<1x256x16xf32>
    tpu.vector_store %arg7[%c0_16, %c0_17, %c0_18], %38 {strides = array<i32>} : memref<1x256x16xf32, #tpu.memory_space<vmem>>, vector<1x256x16xf32>,
    return
  }
  func.func @transform_0(%arg0: i32, %arg1: i32) -> (i32, i32, i32) {
    %c0_i32 = arith.constant 0 : i32
    %c0_i32_0 = arith.constant 0 : i32
    return %arg0, %arg1, %c0_i32 : i32, i32, i32
  }
  func.func @transform_1(%arg0: i32, %arg1: i32) -> (i32, i32) {
    %c0_i32 = arith.constant 0 : i32
    %c0_i32_0 = arith.constant 0 : i32
    %c0_i32_1 = arith.constant 0 : i32
    return %c0_i32, %c0_i32_0 : i32, i32
  }
  func.func @transform_2(%arg0: i32, %arg1: i32) -> (i32, i32) {
    %c0_i32 = arith.constant 0 : i32
    %c0_i32_0 = arith.constant 0 : i32
    %c0_i32_1 = arith.constant 0 : i32
    return %c0_i32, %c0_i32_0 : i32, i32
  }
  func.func @transform_3(%arg0: i32, %arg1: i32) -> (i32, i32) {
    %c0_i32 = arith.constant 0 : i32
    %c0_i32_0 = arith.constant 0 : i32
    %c0_i32_1 = arith.constant 0 : i32
    return %c0_i32, %c0_i32_0 : i32, i32
  }
  func.func @transform_4(%arg0: i32, %arg1: i32) -> (i32, i32) {
    %c0_i32 = arith.constant 0 : i32
    %c0_i32_0 = arith.constant 0 : i32
    %c0_i32_1 = arith.constant 0 : i32
    return %c0_i32, %c0_i32_0 : i32, i32
  }
  func.func @transform_5(%arg0: i32, %arg1: i32) -> (i32, i32, i32) {
    %c0_i32 = arith.constant 0 : i32
    %c0_i32_0 = arith.constant 0 : i32
    return %arg0, %arg1, %c0_i32 : i32, i32, i32
  }
}

</mosaic_0001>

<bundles_post_ra>
// kernel: tpu_custom_call.1
= control target key start
LH: loop header
LB: loop body
LE: loop exit
PB: predicated region body
PF: predicated region fallthrough
CT: control target
= control target key end

     0   :  { %10 = vsyncpa [#allocation3], 0  ;;  %s4337_s0 = inlined_call_operand.hbm [shape: f32[2,256,128], index: 0, kind: input, shape index: {}]   ;;  %s4338_s1 = inlined_call_operand.vmem [shape: bf16[128,128], index: 1, kind: input, shape index: {}]   ;;  %s4339_s2 = inlined_call_operand.vmem [shape: f32[128,16], index: 2, kind: input, shape index: {}]   ;;  %s4340_s3 = inlined_call_operand.vmem [shape: f32[1,16], index: 3, kind: input, shape index: {}]   ;;  %s4341_s4 = inlined_call_operand.vmem [shape: f32[1,16], index: 4, kind: input, shape index: {}]   ;;  %s4342_s5 = inlined_call_operand.vmem [shape: f32[2,256,16], index: 5, kind: output, shape index: {}]  }
   0x1   :  { %12 = vsyncpa [#allocation3 + $0x1], 0  ;;  %s2591_s18 = smov 0   ;;  %s2593_s19 = smov 0  }
   0x2   :  { %s2595_s20 = smov 0   ;;  %s2597_s21 = smov 0  }
   0x3   :  { %s2599_s22 = smov 0   ;;  %s2601_s23 = smov 0  }
   0x4 LB: > { %s1986_s24 = sadd.s32 4294967295, %s2552_s23   ;;  %s30_s25 = sadd.s32 1, %s2548_s22  ;;  %s2552_s23 = sphi %s2601_s23, %s18_s23   ;;  %s2548_s22 = sphi %s2599_s22, %s4428_s22   ;;  %s2544_s21 = sphi %s2597_s21, %s4427_s21   ;;  %s2540_s20 = sphi %s2595_s20, %s4426_s20   ;;  %s2536_s19 = sphi %s2593_s19, %s4425_s19   ;;  %s2532_s18 = sphi %s2591_s18, %s4424_s18  }
   0x5   : > { %p32_p0 = scmp.ge.s32.totalorder %s30_s25, 2  ;;  %s39_s26 = sadd.s32 1, %s2540_s20 }
   0x6   : > { %p46_p1 = scmp.ne.s32.totalorder %s2540_s20, %s2536_s19  ;;  %p47_p2 = scmp.eq.s32.totalorder %s2552_s23, 0 }
   0x7   : > { %s4430_s25 = smov (%p32_p0, %s30_s25), 0  ;;  %p52_p4 = scmp.ne.s32.totalorder %s2536_s19, %s2532_s18 }
   0x8   : > { %p2627_p3 = por %p47_p2, %p46_p1  ;;  %s34_s28 = ssub.s32 %s2548_s22, %s4430_s25 }
   0x9   : > { %p53_p5 = scmp.eq.s32.totalorder %s1986_s24, 0  ;;  %p37_p6 = scmp.eq.s32.totalorder %s34_s28, 0 }
   0xa   : > { %p2249_p8 = scmp.lt.s32.totalorder %s2552_s23, 2  ;;  %s200_s6 = sand.u32 1, %s2540_s20  }
   0xb   : > { %p2634_p7 = por %p53_p5, %p52_p4  ;;  %s2009_s7 = sshll.u32 %s2548_s22, 12 }
   0xc   : > { %s2640_s30 = scalar_select %p37_p6, %s2540_s20, %s39_s26  }
   0xd   : > { %s1990_s8 = sshll.u32 %s200_s6, 8  ;;  %s2647_s11 = scalar_lea.hbm %s4337_s0, %s2009_s7 }
   0xe   : > { %s204_s12 = scalar_lea.vmem [#allocation2], %s1990_s8  ;;  %p2651_p9 = pnand %p2249_p8, %p2627_p3 }
   0xf   : > { %s213_s13 = sshll.u32 %s204_s12, 4  ;;  %s2657_s15 = scalar_lea.sflag [#allocation3], %s200_s6  ;;  %s2655_s13 = int_to_ptr.vmem [resolvable:$true] %s213_s13 }
  0x10   : > { %s2472_s16 = scalar_lea.hbm %s2647_s11, 4096  ;;  %p2474_p11 = pneg %p2651_p9 }
  0x11   : > { %p2473_p10 = scmp.ne.s32.totalorder %s2647_s11, %s2472_s16  ;;  %s2477_s24 = scalar_lea.hbm %s4337_s0, 8192 }
  0x12   : > { %p2478_p0 = scmp.lt.u32.totalorder %s2647_s11, %s4337_s0  ;;  %p2479_p1 = scmp.lt.u32.totalorder %s2477_s24, %s2472_s16 }
  0x13   : > { %p2475_p12 = pnand %p2474_p11, %p2473_p10  ;;  %p2481_p3 = scmp.lt.u32.totalorder %s2472_s16, %s2647_s11 }
  0x14   : > { %p2480_p2 = por %p2479_p1, %p2478_p0 }
  0x15   : > { %p2476_p13 = pneg %p2475_p12 }
  0x16   : > { %p2482_p4 = por %p2481_p3, %p2480_p2 }
  0x18   : > { %p2483_p5 = pnand %p2482_p4, %p2476_p13 }
  0x1a   : > { %2486 = shalt.err (!%p2483_p5)
}
  0x1b   : > { %s2487_s28 = scalar_lea.vmem %s2655_s13, 4096  ;;  %s2554_s6 = smov [#allocation2]  }
  0x1c   : > { %p2488_p6 = scmp.ne.s32.totalorder %s2655_s13, %s2487_s28  ;;  %s2492_s7 = sshll.u32 %s2554_s6, 4  ;;  %s2493_s7 = int_to_ptr.vmem [resolvable:$false] %s2492_s7 }
  0x1d   : > { %s2494_s8 = scalar_lea.vmem %s2493_s7, 8192  ;;  %p2495_p12 = scmp.lt.s32.totalorder %s2655_s13, %s2493_s7 }
  0x1e   : > { %p2490_p8 = pnand %p2488_p6, %p2474_p11  ;;  %p2496_p0 = scmp.lt.s32.totalorder %s2494_s8, %s2487_s28 }
  0x20   : > { %p2491_p10 = pneg %p2490_p8  ;;  %p2497_p1 = por %p2496_p0, %p2495_p12 }
  0x22   : > { %p2498_p2 = pnand %p2497_p1, %p2491_p10 }
  0x24   : > { %2501 = shalt.err (!%p2498_p2)
}
  0x25   : > { %s2555_s9 = smov 128   ;;  %s2556_s10 = smov 8  }
  0x26   : > { %2248 = dma.hbm_to_vmem [thread:$0]  (!%p2651_p9), %s2647_s11, 4096, %s2655_s13, %s2657_s15, %s2555_s9, %s2555_s9, %s2556_s10  }
  0x27   : > { %p1993_p11 = scmp.ge.s32.totalorder %s2552_s23, 1  ;;  %p221_p13 = scmp.lt.s32.totalorder %s2552_s23, 3 }
  0x29   : > { %p222_p3 = pnand %p1993_p11, %p221_p13 }
  0x2b   : > { %225 = sbr.rel (%p222_p3) target bundleno = 1563 (0x61b), region = 40 }
  0x32   : > { %s227_s12 = sand.u32 1, %s2536_s19  }
  0x33   : > { %s1994_s16 = sshll.u32 %s227_s12, 8  ;;  %s228_s17 = scalar_lea.sflag [#allocation3], %s227_s12 }
  0x34   : > { %s2688_s18 = scalar_lea.vmem [#allocation2], %s1994_s16 }
  0x35   : > { %2527 = dma.done.wait (%p2634_p7), %s228_s17, 4096  }
  0x36   : > { %2529 = vsyncadd (%p2634_p7), %s228_s17, 4294963200  ;;  %v2304_v0 = vld [vmem:[%s4338_s1] sm:$0xff]   ;;  %v2305_v1 = vld [vmem:[%s4338_s1 + $0x8] sm:$0xff]   ;;  %s2557_s17 = smov 8   ;;  %s2558_s24 = smov 16   ;;  %vm1858_vm0 = vcmask 130048  }
  0x37   : > { %2083 = vmatprep.subr.bf16.mxu0 %v2304_v0  ;;  %v2306_v2 = vld [vmem:[%s4338_s1 + $0x10] sm:$0xff]   ;;  %v2307_v3 = vld [vmem:[%s4338_s1 + $0x18] sm:$0xff]   ;;  %v274_v4 = vld [vmem:[%s2688_s18] sm:$0xff]  ;;  %s2559_s26 = smov 32   ;;  %s2560_s11 = smov 64  }
  0x38   : > { %2084 = vmatpush3.bf16.msra.mxu0 %v2304_v0  ;;  %v275_v5 = vld [vmem:[%s2688_s18 + $0x8] sm:$0xff]  ;;  %v2308_v7 = vld [vmem:[%s4338_s1 + $0x20] sm:$0xff]   ;;  %v2310_v9 = vld [vmem:[%s4338_s1 + $0x30] sm:$0xff]   ;;  %p264_p7 = scmp.lt.s32.totalorder %s2544_s21, 1 }
  0x39   : > { %2085 = vmatprep.subr.bf16.mxu0 %v2305_v1  ;;  %v306_v6 = vpack.c.bf16 %v275_v5, %v274_v4  ;;  %v2309_v8 = vld [vmem:[%s4338_s1 + $0x28] sm:$0xff]   ;;  %v2311_v10 = vld [vmem:[%s4338_s1 + $0x38] sm:$0xff]   ;;  %v276_v11 = vld [vmem:[%s2688_s18 + $0x10] sm:$0xff] }
  0x3a   : > { %v277_v12 = vld [vmem:[%s2688_s18 + $0x18] sm:$0xff]  ;;  %v278_v13 = vld [vmem:[%s2688_s18 + $0x20] sm:$0xff]  ;;  %v279_v14 = vld [vmem:[%s2688_s18 + $0x28] sm:$0xff]  ;;  %s4432_s21 = smov (!%p264_p7, %s2544_s21), 1 }
  0x3b   : > { %2099 = vmatprep.mubr.bf16.mxu0 %v306_v6  ;;  %v307_v15 = vpack.c.bf16 %v277_v12, %v276_v11  ;;  %v308_v16 = vpack.c.bf16 %v279_v14, %v278_v13  ;;  %v280_v17 = vld [vmem:[%s2688_s18 + $0x30] sm:$0xff]  ;;  %v281_v18 = vld [vmem:[%s2688_s18 + $0x38] sm:$0xff]  ;;  %v282_v19 = vld [vmem:[%s2688_s18 + $0x40] sm:$0xff]  ;;  %s2010_s29 = sshll.u32 %s4432_s21, 8 }
  0x3c   : > { %2086 = vmatpush3.bf16.msra.mxu0 %v2305_v1  ;;  %v283_v20 = vld [vmem:[%s2688_s18 + $0x48] sm:$0xff]  ;;  %v309_v21 = vpack.c.bf16 %v281_v18, %v280_v17  ;;  %v284_v23 = vld [vmem:[%s2688_s18 + $0x50] sm:$0xff]  ;;  %v285_v24 = vld [vmem:[%s2688_s18 + $0x58] sm:$0xff]  ;;  %s4192_s28 = scalar_lea.vmem %s4342_s5, %s2010_s29 }
  0x3d   : > { %2087 = vmatprep.subr.bf16.mxu0 %v2306_v2  ;;  %v310_v22 = vpack.c.bf16 %v283_v20, %v282_v19  ;;  %v286_v25 = vld [vmem:[%s2688_s18 + $0x60] sm:$0xff]  ;;  %v287_v26 = vld [vmem:[%s2688_s18 + $0x68] sm:$0xff]  ;;  %v311_v27 = vpack.c.bf16 %v285_v24, %v284_v23  ;;  %v288_v29 = vld [vmem:[%s2688_s18 + $0x70] sm:$0xff] }
  0x3e   : > { %v312_v28 = vpack.c.bf16 %v287_v26, %v286_v25  ;;  %v289_v30 = vld [vmem:[%s2688_s18 + $0x78] sm:$0xff]  ;;  %v290_v31 = vld [vmem:[%s2688_s18 + $0x80] sm:$0xff]  ;;  %v291_v32 = vld [vmem:[%s2688_s18 + $0x88] sm:$0xff] }
  0x3f   : > { %v313_v33 = vpack.c.bf16 %v289_v30, %v288_v29  ;;  %v314_v34 = vpack.c.bf16 %v291_v32, %v290_v31  ;;  %v292_v35 = vld [vmem:[%s2688_s18 + $0x90] sm:$0xff]  ;;  %v293_v36 = vld [vmem:[%s2688_s18 + $0x98] sm:$0xff]  ;;  %v294_v37 = vld [vmem:[%s2688_s18 + $0xa0] sm:$0xff] }
  0x40   : > { %2088 = vmatpush3.bf16.msra.mxu0 %v2306_v2  ;;  %v295_v38 = vld [vmem:[%s2688_s18 + $0xa8] sm:$0xff]  ;;  %v315_v39 = vpack.c.bf16 %v293_v36, %v292_v35  ;;  %v296_v41 = vld [vmem:[%s2688_s18 + $0xb0] sm:$0xff]  ;;  %v297_v42 = vld [vmem:[%s2688_s18 + $0xb8] sm:$0xff] }
  0x41   : > { %2089 = vmatprep.subr.bf16.mxu0 %v2307_v3  ;;  %v316_v40 = vpack.c.bf16 %v295_v38, %v294_v37  ;;  %v298_v43 = vld [vmem:[%s2688_s18 + $0xc0] sm:$0xff]  ;;  %v299_v44 = vld [vmem:[%s2688_s18 + $0xc8] sm:$0xff]  ;;  %v317_v45 = vpack.c.bf16 %v297_v42, %v296_v41  ;;  %v300_v47 = vld [vmem:[%s2688_s18 + $0xd0] sm:$0xff] }
  0x42   : > { %v318_v46 = vpack.c.bf16 %v299_v44, %v298_v43  ;;  %v301_v48 = vld [vmem:[%s2688_s18 + $0xd8] sm:$0xff]  ;;  %v302_v49 = vld [vmem:[%s2688_s18 + $0xe0] sm:$0xff]  ;;  %v303_v50 = vld [vmem:[%s2688_s18 + $0xe8] sm:$0xff] }
  0x43   : > { %v319_v51 = vpack.c.bf16 %v301_v48, %v300_v47  ;;  %v320_v52 = vpack.c.bf16 %v303_v50, %v302_v49  ;;  %v304_v53 = vld [vmem:[%s2688_s18 + $0xf0] sm:$0xff]  ;;  %v305_v54 = vld [vmem:[%s2688_s18 + $0xf8] sm:$0xff] }
  0x44   : > { %2090 = vmatpush3.bf16.msra.mxu0 %v2307_v3  ;;  %v321_v55 = vpack.c.bf16 %v305_v54, %v304_v53 }
  0x45   : > { %2091 = vmatprep.subr.bf16.mxu0 %v2308_v7 }
  0x48   : > { %2092 = vmatpush3.bf16.msra.mxu0 %v2308_v7 }
  0x49   : > { %2093 = vmatprep.subr.bf16.mxu0 %v2309_v8 }
  0x4c   : > { %2094 = vmatpush3.bf16.msra.mxu0 %v2309_v8 }
  0x4d   : > { %2095 = vmatprep.subr.bf16.mxu0 %v2310_v9 }
  0x50   : > { %2096 = vmatpush3.bf16.msra.mxu0 %v2310_v9 }
  0x51   : > { %2097 = vmatprep.subr.bf16.mxu0 %v2311_v10 }
  0x54   : > { %2098 = vmatpush3.bf16.msra.mxu0 %v2311_v10 }
  0x57   : > { %2100 = vmatmul.mubr.bf16.vlgmr.msra.gmra.mrb[0].mxu0 %v307_v15 }
  0x58   : > { %2103 = vmatprep.mubr.bf16.mxu0 %v308_v16 }
  0x5f   : > { %2104 = vmatmul.mubr.bf16.gmra.mrb[4].mxu0 %v309_v21 }
  0x60   : > { %2107 = vmatprep.mubr.bf16.mxu0 %v310_v22 }
  0x67   : > { %2108 = vmatmul.mubr.bf16.gmra.mrb[8].mxu0 %v311_v27 }
  0x68   : > { %2111 = vmatprep.mubr.bf16.mxu0 %v312_v28 }
  0x6f   : > { %2112 = vmatmul.mubr.bf16.gmra.mrb[12].mxu0 %v313_v33 }
  0x70   : > { %2115 = vmatprep.mubr.bf16.mxu0 %v314_v34 }
  0x77   : > { %2116 = vmatmul.mubr.bf16.gmra.mrb[16].mxu0 %v315_v39 }
  0x78   : > { %2119 = vmatprep.mubr.bf16.mxu0 %v316_v40 }
  0x7f   : > { %2120 = vmatmul.mubr.bf16.gmra.mrb[20].mxu0 %v317_v45 }
  0x80   : > { %2123 = vmatprep.mubr.bf16.mxu0 %v318_v46 }
  0x87   : > { %2124 = vmatmul.mubr.bf16.gmra.mrb[24].mxu0 %v319_v51 }
  0x88   : > { %2127 = vmatprep.mubr.bf16.mxu0 %v320_v52 }
  0x8f   : > { %2128 = vmatmul.mubr.bf16.gmra.mrb[28].mxu0 %v321_v55 }
 0x12a   : > { %v2750_v56 = vpop.f32.mrb[0].mxu0 }
 0x12b   : > { %551 = vrot.lane.b32.xlu1 %v2750_v56, %s2557_s17  ;;  %v2754_v57 = vpop.f32.mrb[1].mxu0 }
 0x12c   : > { %547 = vrot.lane.b32.xlu0 %v2754_v57, %s2557_s17  ;;  %v2758_v58 = vpop.f32.mrb[2].mxu0 }
 0x12d   : > { %v2760_v59 = vpop.f32.mrb[3].mxu0 }
 0x12f   : > { %553 = vrot.lane.b32.xlu1 %v2758_v58, %s2557_s17 }
 0x130   : > { %549 = vrot.lane.b32.xlu0 %v2760_v59, %s2557_s17 }
 0x132   : > { %v2766_v60 = vpop.f32.mrb[4].mxu0 }
 0x133   : > { %v2768_v61 = vpop.f32.mrb[5].mxu0 }
 0x134   : > { %559 = vrot.lane.b32.xlu0 %v2766_v60, %s2557_s17  ;;  %v2772_v62 = vpop.f32.mrb[6].mxu0 }
 0x135   : > { %561 = vrot.lane.b32.xlu1 %v2772_v62, %s2557_s17  ;;  %v2776_v63 = vpop.f32.mrb[7].mxu0 }
 0x138   : > { %555 = vrot.lane.b32.xlu0 %v2768_v61, %s2557_s17 }
 0x139   : > { %557 = vrot.lane.b32.xlu1 %v2776_v63, %s2557_s17 }
 0x13a   : > { %v2782_v0 = vpop.f32.mrb[8].mxu0 }
 0x13b   : > { %v2784_v1 = vpop.f32.mrb[9].mxu0 }
 0x13c   : > { %567 = vrot.lane.b32.xlu0 %v2782_v0, %s2557_s17  ;;  %v2788_v2 = vpop.f32.mrb[10].mxu0 }
 0x13d   : > { %569 = vrot.lane.b32.xlu1 %v2788_v2, %s2557_s17  ;;  %v2792_v3 = vpop.f32.mrb[11].mxu0 }
 0x140   : > { %563 = vrot.lane.b32.xlu0 %v2784_v1, %s2557_s17 }
 0x141   : > { %565 = vrot.lane.b32.xlu1 %v2792_v3, %s2557_s17 }
 0x142   : > { %v2798_v4 = vpop.f32.mrb[12].mxu0 }
 0x143   : > { %v2800_v5 = vpop.f32.mrb[13].mxu0 }
 0x144   : > { %575 = vrot.lane.b32.xlu0 %v2798_v4, %s2557_s17  ;;  %v2804_v6 = vpop.f32.mrb[14].mxu0 }
 0x145   : > { %577 = vrot.lane.b32.xlu1 %v2804_v6, %s2557_s17  ;;  %v2808_v7 = vpop.f32.mrb[15].mxu0 }
 0x148   : > { %571 = vrot.lane.b32.xlu0 %v2800_v5, %s2557_s17 }
 0x149   : > { %573 = vrot.lane.b32.xlu1 %v2808_v7, %s2557_s17 }
 0x14a   : > { %v2814_v8 = vpop.f32.mrb[16].mxu0 }
 0x14b   : > { %v2816_v9 = vpop.f32.mrb[17].mxu0 }
 0x14c   : > { %583 = vrot.lane.b32.xlu0 %v2814_v8, %s2557_s17  ;;  %v2820_v10 = vpop.f32.mrb[18].mxu0 }
 0x14d   : > { %585 = vrot.lane.b32.xlu1 %v2820_v10, %s2557_s17  ;;  %v2824_v11 = vpop.f32.mrb[19].mxu0 }
 0x150   : > { %579 = vrot.lane.b32.xlu0 %v2816_v9, %s2557_s17 }
 0x151   : > { %581 = vrot.lane.b32.xlu1 %v2824_v11, %s2557_s17 }
 0x152   : > { %v2830_v12 = vpop.f32.mrb[20].mxu0 }
 0x153   : > { %v2832_v13 = vpop.f32.mrb[21].mxu0 }
 0x154   : > { %591 = vrot.lane.b32.xlu0 %v2830_v12, %s2557_s17  ;;  %v2836_v14 = vpop.f32.mrb[22].mxu0 }
 0x155   : > { %4372 = vst [vmem:[#allocation5_spill] sm:$0xff] %v2836_v14  ;;  %593 = vrot.lane.b32.xlu1 %v2836_v14, %s2557_s17  ;;  %v2840_v15 = vpop.f32.mrb[23].mxu0 }
 0x156   : > { %4373 = vst [vmem:[#allocation6_spill] sm:$0xff] %v2840_v15 }
 0x158   : > { %587 = vrot.lane.b32.xlu0 %v2832_v13, %s2557_s17 }
 0x159   : > { %589 = vrot.lane.b32.xlu1 %v2840_v15, %s2557_s17 }
 0x15a   : > { %v2846_v16 = vpop.f32.mrb[24].mxu0 }
 0x15b   : > { %4374 = vst [vmem:[#allocation7_spill] sm:$0xff] %v2846_v16  ;;  %v2848_v17 = vpop.f32.mrb[25].mxu0 }
 0x15c   : > { %4375 = vst [vmem:[#allocation8_spill] sm:$0xff] %v2848_v17  ;;  %599 = vrot.lane.b32.xlu0 %v2846_v16, %s2557_s17  ;;  %v2852_v18 = vpop.f32.mrb[26].mxu0 }
 0x15d   : > { %4376 = vst [vmem:[#allocation9_spill] sm:$0xff] %v2852_v18  ;;  %601 = vrot.lane.b32.xlu1 %v2852_v18, %s2557_s17  ;;  %v2856_v19 = vpop.f32.mrb[27].mxu0 }
 0x15e   : > { %4377 = vst [vmem:[#allocation10_spill] sm:$0xff] %v2856_v19 }
 0x160   : > { %595 = vrot.lane.b32.xlu0 %v2848_v17, %s2557_s17 }
 0x161   : > { %597 = vrot.lane.b32.xlu1 %v2856_v19, %s2557_s17 }
 0x162   : > { %v2862_v20 = vpop.f32.mrb[28].mxu0 }
 0x163   : > { %4378 = vst [vmem:[#allocation11_spill] sm:$0xff] %v2862_v20  ;;  %v2864_v21 = vpop.f32.mrb[29].mxu0 }
 0x164   : > { %4379 = vst [vmem:[#allocation12_spill] sm:$0xff] %v2864_v21  ;;  %607 = vrot.lane.b32.xlu0 %v2862_v20, %s2557_s17  ;;  %v2868_v22 = vpop.f32.mrb[30].mxu0 }
 0x165   : > { %4380 = vst [vmem:[#allocation13_spill] sm:$0xff] %v2868_v22  ;;  %v2870_v23 = vpop.f32.mrb[31].mxu0 }
 0x166   : > { %4381 = vst [vmem:[#allocation14_spill] sm:$0xff] %v2870_v23  ;;  %605 = vrot.lane.b32.xlu1 %v2870_v23, %s2557_s17 }
 0x168   : > { %603 = vrot.lane.b32.xlu0 %v2864_v21, %s2557_s17 }
 0x16c   : > { %609 = vrot.lane.b32.xlu0 %v2868_v22, %s2557_s17 }
 0x19d   : > { %v552_v24 = vpop.permute.xlu1 %551 }
 0x19e   : > { %v2879_v25 = vmax.f32 %v2750_v56, %v552_v24  ;;  %v548_v26 = vpop.permute.xlu0 %547 }
 0x19f   : > { %v2882_v27 = vmax.f32 %v2754_v57, %v548_v26 }
 0x1a0   : > { %647 = vrot.lane.b32.xlu0 %v2879_v25, %s2558_s24 }
 0x1a1   : > { %v554_v28 = vpop.permute.xlu1 %553  ;;  %643 = vrot.lane.b32.xlu1 %v2882_v27, %s2558_s24 }
 0x1a2   : > { %v2889_v29 = vmax.f32 %v2758_v58, %v554_v28  ;;  %v550_v30 = vpop.permute.xlu0 %549 }
 0x1a3   : > { %v2894_v32 = vmax.f32 %v2760_v59, %v550_v30 }
 0x1a5   : > { %649 = vrot.lane.b32.xlu1 %v2889_v29, %s2558_s24 }
 0x1a6   : > { %v560_v31 = vpop.permute.xlu0 %559 }
 0x1a7   : > { %v2897_v33 = vmax.f32 %v2766_v60, %v560_v31  ;;  %v562_v34 = vpop.permute.xlu1 %561 }
 0x1a8   : > { %v2904_v36 = vmax.f32 %v2772_v62, %v562_v34 }
 0x1a9   : > { %655 = vrot.lane.b32.xlu0 %v2897_v33, %s2558_s24  ;;  %645 = vrot.lane.b32.xlu1 %v2894_v32, %s2558_s24 }
 0x1aa   : > { %v556_v35 = vpop.permute.xlu0 %555 }
 0x1ab   : > { %v2907_v37 = vmax.f32 %v2768_v61, %v556_v35  ;;  %v558_v38 = vpop.permute.xlu1 %557 }
 0x1ac   : > { %v2914_v40 = vmax.f32 %v2776_v63, %v558_v38 }
 0x1ad   : > { %651 = vrot.lane.b32.xlu0 %v2907_v37, %s2558_s24  ;;  %657 = vrot.lane.b32.xlu1 %v2904_v36, %s2558_s24 }
 0x1ae   : > { %v568_v39 = vpop.permute.xlu0 %567 }
 0x1af   : > { %v2917_v41 = vmax.f32 %v2782_v0, %v568_v39  ;;  %v570_v42 = vpop.permute.xlu1 %569 }
 0x1b0   : > { %v2924_v44 = vmax.f32 %v2788_v2, %v570_v42 }
 0x1b1   : > { %663 = vrot.lane.b32.xlu0 %v2917_v41, %s2558_s24  ;;  %653 = vrot.lane.b32.xlu1 %v2914_v40, %s2558_s24 }
 0x1b2   : > { %v564_v43 = vpop.permute.xlu0 %563 }
 0x1b3   : > { %v2927_v45 = vmax.f32 %v2784_v1, %v564_v43  ;;  %v566_v46 = vpop.permute.xlu1 %565 }
 0x1b4   : > { %v2934_v48 = vmax.f32 %v2792_v3, %v566_v46 }
 0x1b5   : > { %659 = vrot.lane.b32.xlu0 %v2927_v45, %s2558_s24  ;;  %665 = vrot.lane.b32.xlu1 %v2924_v44, %s2558_s24 }
 0x1b6   : > { %v576_v47 = vpop.permute.xlu0 %575 }
 0x1b7   : > { %v2937_v49 = vmax.f32 %v2798_v4, %v576_v47  ;;  %v578_v50 = vpop.permute.xlu1 %577 }
 0x1b8   : > { %v2944_v52 = vmax.f32 %v2804_v6, %v578_v50 }
 0x1b9   : > { %671 = vrot.lane.b32.xlu0 %v2937_v49, %s2558_s24  ;;  %661 = vrot.lane.b32.xlu1 %v2934_v48, %s2558_s24 }
 0x1ba   : > { %v572_v51 = vpop.permute.xlu0 %571 }
 0x1bb   : > { %v2947_v53 = vmax.f32 %v2800_v5, %v572_v51  ;;  %v574_v54 = vpop.permute.xlu1 %573 }
 0x1bc   : > { %v2954_v24 = vmax.f32 %v2808_v7, %v574_v54 }
 0x1bd   : > { %667 = vrot.lane.b32.xlu0 %v2947_v53, %s2558_s24  ;;  %673 = vrot.lane.b32.xlu1 %v2944_v52, %s2558_s24 }
 0x1be   : > { %v584_v55 = vpop.permute.xlu0 %583 }
 0x1bf   : > { %v2957_v26 = vmax.f32 %v2814_v8, %v584_v55  ;;  %v586_v28 = vpop.permute.xlu1 %585 }
 0x1c0   : > { %v2964_v31 = vmax.f32 %v2820_v10, %v586_v28 }
 0x1c1   : > { %679 = vrot.lane.b32.xlu0 %v2957_v26, %s2558_s24  ;;  %669 = vrot.lane.b32.xlu1 %v2954_v24, %s2558_s24 }
 0x1c2   : > { %v580_v30 = vpop.permute.xlu0 %579 }
 0x1c3   : > { %v2967_v34 = vmax.f32 %v2816_v9, %v580_v30  ;;  %v582_v35 = vpop.permute.xlu1 %581 }
 0x1c4   : > { %v2974_v39 = vmax.f32 %v2824_v11, %v582_v35 }
 0x1c5   : > { %675 = vrot.lane.b32.xlu0 %v2967_v34, %s2558_s24  ;;  %681 = vrot.lane.b32.xlu1 %v2964_v31, %s2558_s24 }
 0x1c6   : > { %v592_v38 = vpop.permute.xlu0 %591 }
 0x1c7   : > { %v2977_v42 = vmax.f32 %v2830_v12, %v592_v38  ;;  %v594_v43 = vpop.permute.xlu1 %593 }
 0x1c8   : > { %v2984_v47 = vmax.f32 %v2836_v14, %v594_v43 }
 0x1c9   : > { %687 = vrot.lane.b32.xlu0 %v2977_v42, %s2558_s24  ;;  %677 = vrot.lane.b32.xlu1 %v2974_v39, %s2558_s24 }
 0x1ca   : > { %v588_v46 = vpop.permute.xlu0 %587 }
 0x1cb   : > { %v2987_v50 = vmax.f32 %v2832_v13, %v588_v46  ;;  %v590_v51 = vpop.permute.xlu1 %589 }
 0x1cc   : > { %v2994_v55 = vmax.f32 %v2840_v15, %v590_v51 }
 0x1cd   : > { %683 = vrot.lane.b32.xlu0 %v2987_v50, %s2558_s24  ;;  %689 = vrot.lane.b32.xlu1 %v2984_v47, %s2558_s24 }
 0x1ce   : > { %v600_v54 = vpop.permute.xlu0 %599 }
 0x1cf   : > { %v2997_v28 = vmax.f32 %v2846_v16, %v600_v54  ;;  %v602_v30 = vpop.permute.xlu1 %601 }
 0x1d0   : > { %v3004_v38 = vmax.f32 %v2852_v18, %v602_v30 }
 0x1d1   : > { %695 = vrot.lane.b32.xlu0 %v2997_v28, %s2558_s24  ;;  %685 = vrot.lane.b32.xlu1 %v2994_v55, %s2558_s24 }
 0x1d2   : > { %v596_v35 = vpop.permute.xlu0 %595 }
 0x1d3   : > { %v3007_v43 = vmax.f32 %v2848_v17, %v596_v35  ;;  %v598_v46 = vpop.permute.xlu1 %597 }
 0x1d4   : > { %v3014_v54 = vmax.f32 %v2856_v19, %v598_v46 }
 0x1d5   : > { %691 = vrot.lane.b32.xlu0 %v3007_v43, %s2558_s24  ;;  %697 = vrot.lane.b32.xlu1 %v3004_v38, %s2558_s24 }
 0x1d6   : > { %v608_v51 = vpop.permute.xlu0 %607 }
 0x1d7   : > { %v3017_v16 = vmax.f32 %v2862_v20, %v608_v51 }
 0x1d8   : > { %v606_v15 = vpop.permute.xlu1 %605 }
 0x1d9   : > { %703 = vrot.lane.b32.xlu0 %v3017_v16, %s2558_s24  ;;  %693 = vrot.lane.b32.xlu1 %v3014_v54, %s2558_s24  ;;  %v3024_v35 = vmax.f32 %v2870_v23, %v606_v15 }
 0x1da   : > { %v604_v30 = vpop.permute.xlu0 %603 }
 0x1db   : > { %v3027_v18 = vmax.f32 %v2864_v21, %v604_v30 }
 0x1dd   : > { %699 = vrot.lane.b32.xlu0 %v3027_v18, %s2558_s24  ;;  %701 = vrot.lane.b32.xlu1 %v3024_v35, %s2558_s24 }
 0x1de   : > { %v610_v46 = vpop.permute.xlu0 %609 }
 0x1df   : > { %v3034_v51 = vmax.f32 %v2868_v22, %v610_v46 }
 0x1e1   : > { %705 = vrot.lane.b32.xlu0 %v3034_v51, %s2558_s24 }
 0x212   : > { %v648_v20 = vpop.permute.xlu0 %647 }
 0x213   : > { %v3039_v15 = vmax.f32 %v2879_v25, %v648_v20  ;;  %v644_v23 = vpop.permute.xlu1 %643 }
 0x214   : > { %v3042_v30 = vmax.f32 %v2882_v27, %v644_v23 }
 0x215   : > { %743 = vrot.lane.b32.xlu0 %v3039_v15, %s2559_s26 }
 0x216   : > { %739 = vrot.lane.b32.xlu1 %v3042_v30, %s2559_s26 }
 0x217   : > { %v650_v46 = vpop.permute.xlu1 %649 }
 0x218   : > { %v3049_v22 = vmax.f32 %v2889_v29, %v650_v46 }
 0x21a   : > { %745 = vrot.lane.b32.xlu1 %v3049_v22, %s2559_s26 }
 0x21b   : > { %v656_v20 = vpop.permute.xlu0 %655  ;;  %v646_v25 = vpop.permute.xlu1 %645 }
 0x21c   : > { %v3054_v21 = vmax.f32 %v2897_v33, %v656_v20  ;;  %v3057_v23 = vmax.f32 %v2894_v32, %v646_v25 }
 0x21e   : > { %751 = vrot.lane.b32.xlu0 %v3054_v21, %s2559_s26  ;;  %741 = vrot.lane.b32.xlu1 %v3057_v23, %s2559_s26 }
 0x21f   : > { %v652_v27 = vpop.permute.xlu0 %651  ;;  %v658_v29 = vpop.permute.xlu1 %657 }
 0x220   : > { %v3064_v46 = vmax.f32 %v2907_v37, %v652_v27  ;;  %v3067_v19 = vmax.f32 %v2904_v36, %v658_v29 }
 0x222   : > { %747 = vrot.lane.b32.xlu0 %v3064_v46, %s2559_s26  ;;  %753 = vrot.lane.b32.xlu1 %v3067_v19, %s2559_s26 }
 0x223   : > { %v664_v32 = vpop.permute.xlu0 %663  ;;  %v654_v33 = vpop.permute.xlu1 %653 }
 0x224   : > { %v3074_v20 = vmax.f32 %v2917_v41, %v664_v32  ;;  %v3077_v25 = vmax.f32 %v2914_v40, %v654_v33 }
 0x226   : > { %759 = vrot.lane.b32.xlu0 %v3074_v20, %s2559_s26  ;;  %749 = vrot.lane.b32.xlu1 %v3077_v25, %s2559_s26 }
 0x227   : > { %v660_v36 = vpop.permute.xlu0 %659  ;;  %v666_v37 = vpop.permute.xlu1 %665 }
 0x228   : > { %v3084_v27 = vmax.f32 %v2927_v45, %v660_v36  ;;  %v3087_v29 = vmax.f32 %v2924_v44, %v666_v37 }
 0x22a   : > { %755 = vrot.lane.b32.xlu0 %v3084_v27, %s2559_s26  ;;  %761 = vrot.lane.b32.xlu1 %v3087_v29, %s2559_s26 }
 0x22b   : > { %v672_v40 = vpop.permute.xlu0 %671  ;;  %v662_v41 = vpop.permute.xlu1 %661 }
 0x22c   : > { %v3094_v32 = vmax.f32 %v2937_v49, %v672_v40  ;;  %v3097_v33 = vmax.f32 %v2934_v48, %v662_v41 }
 0x22e   : > { %767 = vrot.lane.b32.xlu0 %v3094_v32, %s2559_s26  ;;  %757 = vrot.lane.b32.xlu1 %v3097_v33, %s2559_s26 }
 0x22f   : > { %v668_v44 = vpop.permute.xlu0 %667  ;;  %v674_v45 = vpop.permute.xlu1 %673 }
 0x230   : > { %v3104_v36 = vmax.f32 %v2947_v53, %v668_v44  ;;  %v3107_v37 = vmax.f32 %v2944_v52, %v674_v45 }
 0x232   : > { %763 = vrot.lane.b32.xlu0 %v3104_v36, %s2559_s26  ;;  %769 = vrot.lane.b32.xlu1 %v3107_v37, %s2559_s26 }
 0x233   : > { %v680_v48 = vpop.permute.xlu0 %679  ;;  %v670_v49 = vpop.permute.xlu1 %669 }
 0x234   : > { %v3114_v40 = vmax.f32 %v2957_v26, %v680_v48  ;;  %v3117_v41 = vmax.f32 %v2954_v24, %v670_v49 }
 0x236   : > { %775 = vrot.lane.b32.xlu0 %v3114_v40, %s2559_s26  ;;  %765 = vrot.lane.b32.xlu1 %v3117_v41, %s2559_s26 }
 0x237   : > { %v676_v52 = vpop.permute.xlu0 %675  ;;  %v682_v53 = vpop.permute.xlu1 %681 }
 0x238   : > { %v3124_v44 = vmax.f32 %v2967_v34, %v676_v52  ;;  %v3127_v45 = vmax.f32 %v2964_v31, %v682_v53 }
 0x23a   : > { %771 = vrot.lane.b32.xlu0 %v3124_v44, %s2559_s26  ;;  %777 = vrot.lane.b32.xlu1 %v3127_v45, %s2559_s26 }
 0x23b   : > { %v688_v24 = vpop.permute.xlu0 %687  ;;  %v678_v26 = vpop.permute.xlu1 %677 }
 0x23c   : > { %v3134_v48 = vmax.f32 %v2977_v42, %v688_v24  ;;  %v3137_v49 = vmax.f32 %v2974_v39, %v678_v26 }
 0x23e   : > { %783 = vrot.lane.b32.xlu0 %v3134_v48, %s2559_s26  ;;  %773 = vrot.lane.b32.xlu1 %v3137_v49, %s2559_s26 }
 0x23f   : > { %v684_v31 = vpop.permute.xlu0 %683  ;;  %v690_v34 = vpop.permute.xlu1 %689 }
 0x240   : > { %v3144_v52 = vmax.f32 %v2987_v50, %v684_v31  ;;  %v3147_v53 = vmax.f32 %v2984_v47, %v690_v34 }
 0x242   : > { %779 = vrot.lane.b32.xlu0 %v3144_v52, %s2559_s26  ;;  %785 = vrot.lane.b32.xlu1 %v3147_v53, %s2559_s26 }
 0x243   : > { %v696_v39 = vpop.permute.xlu0 %695  ;;  %v686_v42 = vpop.permute.xlu1 %685 }
 0x244   : > { %v3154_v24 = vmax.f32 %v2997_v28, %v696_v39  ;;  %v3157_v26 = vmax.f32 %v2994_v55, %v686_v42 }
 0x246   : > { %791 = vrot.lane.b32.xlu0 %v3154_v24, %s2559_s26  ;;  %781 = vrot.lane.b32.xlu1 %v3157_v26, %s2559_s26 }
 0x247   : > { %v692_v47 = vpop.permute.xlu0 %691  ;;  %v698_v50 = vpop.permute.xlu1 %697 }
 0x248   : > { %v3164_v31 = vmax.f32 %v3007_v43, %v692_v47  ;;  %v3167_v34 = vmax.f32 %v3004_v38, %v698_v50 }
 0x24a   : > { %787 = vrot.lane.b32.xlu0 %v3164_v31, %s2559_s26  ;;  %793 = vrot.lane.b32.xlu1 %v3167_v34, %s2559_s26 }
 0x24b   : > { %v704_v55 = vpop.permute.xlu0 %703  ;;  %v694_v28 = vpop.permute.xlu1 %693 }
 0x24c   : > { %v3174_v39 = vmax.f32 %v3017_v16, %v704_v55  ;;  %v3177_v42 = vmax.f32 %v3014_v54, %v694_v28 }
 0x24e   : > { %799 = vrot.lane.b32.xlu0 %v3174_v39, %s2559_s26  ;;  %789 = vrot.lane.b32.xlu1 %v3177_v42, %s2559_s26 }
 0x24f   : > { %v700_v38 = vpop.permute.xlu0 %699  ;;  %v702_v43 = vpop.permute.xlu1 %701 }
 0x250   : > { %v3184_v47 = vmax.f32 %v3027_v18, %v700_v38  ;;  %v3187_v50 = vmax.f32 %v3024_v35, %v702_v43 }
 0x252   : > { %795 = vrot.lane.b32.xlu0 %v3184_v47, %s2559_s26  ;;  %797 = vrot.lane.b32.xlu1 %v3187_v50, %s2559_s26 }
 0x253   : > { %v706_v16 = vpop.permute.xlu0 %705 }
 0x254   : > { %v3194_v54 = vmax.f32 %v3034_v51, %v706_v16 }
 0x256   : > { %801 = vrot.lane.b32.xlu0 %v3194_v54, %s2559_s26 }
 0x287   : > { %v744_v55 = vpop.permute.xlu0 %743 }
 0x288   : > { %v3199_v18 = vmax.f32 %v3039_v15, %v744_v55  ;;  %v740_v28 = vpop.permute.xlu1 %739 }
 0x289   : > { %v3202_v35 = vmax.f32 %v3042_v30, %v740_v28 }
 0x28a   : > { %839 = vrot.lane.b32.xlu0 %v3199_v18, %s2560_s11 }
 0x28b   : > { %835 = vrot.lane.b32.xlu1 %v3202_v35, %s2560_s11 }
 0x28c   : > { %v746_v51 = vpop.permute.xlu1 %745 }
 0x28d   : > { %v3214_v30 = vmax.f32 %v3049_v22, %v746_v51 }
 0x290   : > { %v752_v38 = vpop.permute.xlu0 %751  ;;  %v742_v43 = vpop.permute.xlu1 %741 }
 0x291   : > { %v3209_v16 = vmax.f32 %v3057_v23, %v742_v43  ;;  %v3224_v43 = vmax.f32 %v3054_v21, %v752_v38 }
 0x293   : > { %837 = vrot.lane.b32.xlu1 %v3209_v16, %s2560_s11 }
 0x294   : > { %v748_v15 = vpop.permute.xlu0 %747  ;;  %v754_v55 = vpop.permute.xlu1 %753 }
 0x295   : > { %v3217_v28 = vmax.f32 %v3064_v46, %v748_v15  ;;  %v3234_v51 = vmax.f32 %v3067_v19, %v754_v55 }
 0x297   : > { %843 = vrot.lane.b32.xlu0 %v3217_v28, %s2560_s11  ;;  %841 = vrot.lane.b32.xlu1 %v3214_v30, %s2560_s11 }
 0x298   : > { %v760_v17 = vpop.permute.xlu0 %759  ;;  %v750_v23 = vpop.permute.xlu1 %749 }
 0x299   : > { %v3227_v14 = vmax.f32 %v3077_v25, %v750_v23  ;;  %v3244_v38 = vmax.f32 %v3074_v20, %v760_v17 }
 0x29b   : > { %847 = vrot.lane.b32.xlu0 %v3224_v43, %s2560_s11  ;;  %845 = vrot.lane.b32.xlu1 %v3227_v14, %s2560_s11 }
 0x29c   : > { %v756_v22 = vpop.permute.xlu0 %755  ;;  %v762_v46 = vpop.permute.xlu1 %761 }
 0x29d   : > { %v3237_v15 = vmax.f32 %v3084_v27, %v756_v22  ;;  %v3254_v55 = vmax.f32 %v3087_v29, %v762_v46 }
 0x29f   : > { %851 = vrot.lane.b32.xlu0 %v3237_v15, %s2560_s11  ;;  %849 = vrot.lane.b32.xlu1 %v3234_v51, %s2560_s11 }
 0x2a0   : > { %v768_v21 = vpop.permute.xlu0 %767  ;;  %v758_v25 = vpop.permute.xlu1 %757 }
 0x2a1   : > { %v3247_v23 = vmax.f32 %v3097_v33, %v758_v25  ;;  %v3264_v33 = vmax.f32 %v3094_v32, %v768_v21 }
 0x2a3   : > { %855 = vrot.lane.b32.xlu0 %v3244_v38, %s2560_s11  ;;  %853 = vrot.lane.b32.xlu1 %v3247_v23, %s2560_s11 }
 0x2a4   : > { %v764_v19 = vpop.permute.xlu0 %763  ;;  %v770_v27 = vpop.permute.xlu1 %769 }
 0x2a5   : > { %v3257_v22 = vmax.f32 %v3104_v36, %v764_v19  ;;  %v3274_v46 = vmax.f32 %v3107_v37, %v770_v27 }
 0x2a7   : > { %859 = vrot.lane.b32.xlu0 %v3257_v22, %s2560_s11  ;;  %857 = vrot.lane.b32.xlu1 %v3254_v55, %s2560_s11 }
 0x2a8   : > { %v776_v17 = vpop.permute.xlu0 %775  ;;  %v766_v20 = vpop.permute.xlu1 %765 }
 0x2a9   : > { %v3267_v25 = vmax.f32 %v3117_v41, %v766_v20  ;;  %v3284_v21 = vmax.f32 %v3114_v40, %v776_v17 }
 0x2ab   : > { %863 = vrot.lane.b32.xlu0 %v3264_v33, %s2560_s11  ;;  %861 = vrot.lane.b32.xlu1 %v3267_v25, %s2560_s11 }
 0x2ac   : > { %v772_v29 = vpop.permute.xlu0 %771  ;;  %v778_v36 = vpop.permute.xlu1 %777 }
 0x2ad   : > { %v3277_v19 = vmax.f32 %v3124_v44, %v772_v29  ;;  %v3294_v27 = vmax.f32 %v3127_v45, %v778_v36 }
 0x2af   : > { %867 = vrot.lane.b32.xlu0 %v3277_v19, %s2560_s11  ;;  %865 = vrot.lane.b32.xlu1 %v3274_v46, %s2560_s11 }
 0x2b0   : > { %v784_v32 = vpop.permute.xlu0 %783  ;;  %v774_v41 = vpop.permute.xlu1 %773 }
 0x2b1   : > { %v3287_v20 = vmax.f32 %v3137_v49, %v774_v41  ;;  %v3304_v17 = vmax.f32 %v3134_v48, %v784_v32 }
 0x2b3   : > { %871 = vrot.lane.b32.xlu0 %v3284_v21, %s2560_s11  ;;  %869 = vrot.lane.b32.xlu1 %v3287_v20, %s2560_s11 }
 0x2b4   : > { %v780_v37 = vpop.permute.xlu0 %779  ;;  %v786_v44 = vpop.permute.xlu1 %785 }
 0x2b5   : > { %v3297_v29 = vmax.f32 %v3144_v52, %v780_v37  ;;  %v3314_v36 = vmax.f32 %v3147_v53, %v786_v44 }
 0x2b7   : > { %875 = vrot.lane.b32.xlu0 %v3297_v29, %s2560_s11  ;;  %873 = vrot.lane.b32.xlu1 %v3294_v27, %s2560_s11 }
 0x2b8   : > { %v792_v40 = vpop.permute.xlu0 %791  ;;  %v782_v49 = vpop.permute.xlu1 %781 }
 0x2b9   : > { %v3307_v41 = vmax.f32 %v3157_v26, %v782_v49  ;;  %v3324_v32 = vmax.f32 %v3154_v24, %v792_v40 }
 0x2bb   : > { %879 = vrot.lane.b32.xlu0 %v3304_v17, %s2560_s11  ;;  %877 = vrot.lane.b32.xlu1 %v3307_v41, %s2560_s11 }
 0x2bc   : > { %v788_v45 = vpop.permute.xlu0 %787  ;;  %v794_v52 = vpop.permute.xlu1 %793 }
 0x2bd   : > { %v3317_v37 = vmax.f32 %v3164_v31, %v788_v45  ;;  %v3334_v31 = vmax.f32 %v3167_v34, %v794_v52 }
 0x2bf   : > { %883 = vrot.lane.b32.xlu0 %v3317_v37, %s2560_s11  ;;  %881 = vrot.lane.b32.xlu1 %v3314_v36, %s2560_s11 }
 0x2c0   : > { %v800_v48 = vpop.permute.xlu0 %799  ;;  %v790_v26 = vpop.permute.xlu1 %789 }
 0x2c1   : > { %v3327_v49 = vmax.f32 %v3177_v42, %v790_v26  ;;  %v3344_v24 = vmax.f32 %v3174_v39, %v800_v48 }
 0x2c3   : > { %887 = vrot.lane.b32.xlu0 %v3324_v32, %s2560_s11  ;;  %885 = vrot.lane.b32.xlu1 %v3327_v49, %s2560_s11  ;;  %4382 = vst [vmem:[#allocation15_spill] sm:$0xff] %v3344_v24 }
 0x2c4   : > { %v796_v53 = vpop.permute.xlu0 %795  ;;  %v798_v45 = vpop.permute.xlu1 %797 }
 0x2c5   : > { %v3337_v44 = vmax.f32 %v3184_v47, %v796_v53  ;;  %v3347_v42 = vmax.f32 %v3187_v50, %v798_v45 }
 0x2c7   : > { %891 = vrot.lane.b32.xlu0 %v3337_v44, %s2560_s11  ;;  %889 = vrot.lane.b32.xlu1 %v3334_v31, %s2560_s11  ;;  %4383 = vst [vmem:[#allocation16_spill] sm:$0xff] %v3347_v42 }
 0x2c8   : > { %v802_v40 = vpop.permute.xlu0 %801 }
 0x2c9   : > { %v3354_v34 = vmax.f32 %v3194_v54, %v802_v40 }
 0x2cb   : > { %895 = vrot.lane.b32.xlu0 %v3344_v24, %s2560_s11  ;;  %893 = vrot.lane.b32.xlu1 %v3347_v42, %s2560_s11  ;;  %4384 = vst [vmem:[#allocation17_spill] sm:$0xff] %v3354_v34 }
 0x2cf   : > { %897 = vrot.lane.b32.xlu1 %v3354_v34, %s2560_s11 }
 0x2fc   : > { %v840_v47 = vpop.permute.xlu0 %839 }
 0x2fd   : > { %v901_v39 = vmax.f32 %v3199_v18, %v840_v47  ;;  %v836_v52 = vpop.permute.xlu1 %835 }
 0x2fe   : > { %v899_v50 = vmax.f32 %v3202_v35, %v836_v52 }
 0x2ff   : > { %v933_v48 = vsub.f32 %v2750_v56, %v901_v39 }
 0x300   : > { %v931_v26 = vsub.f32 %v2754_v57, %v899_v50 }
 0x301   : > { %v967_v53 = vmul.f32 1.442695, %v933_v48 }
 0x302   : > { %v963_v45 = vmul.f32 1.442695, %v931_v26 }
 0x303   : > { %2312 = vpow2.f32 %v967_v53 }
 0x304   : > { %2314 = vpow2.f32 %v963_v45 }
 0x305   : > { %v838_v42 = vpop.permute.xlu1 %837 }
 0x306   : > { %v900_v54 = vmax.f32 %v3209_v16, %v838_v42 }
 0x308   : > { %v932_v56 = vsub.f32 %v2760_v59, %v900_v54 }
 0x309   : > { %v844_v40 = vpop.permute.xlu0 %843  ;;  %v842_v24 = vpop.permute.xlu1 %841 }
 0x30a   : > { %v902_v34 = vmax.f32 %v3214_v30, %v842_v24  ;;  %v903_v18 = vmax.f32 %v3217_v28, %v844_v40  ;;  %v965_v28 = vmul.f32 1.442695, %v932_v56 }
 0x30c   : > { %v934_v47 = vsub.f32 %v2758_v58, %v902_v34  ;;  %v935_v16 = vsub.f32 %v2768_v61, %v903_v18 }
 0x30d   : > { %v3366_v35 = vpop.eup %2312  ;;  %v848_v57 = vpop.permute.xlu0 %847 }
 0x30e   : > { %v846_v39 = vpop.permute.xlu1 %845  ;;  %v969_v52 = vmul.f32 1.442695, %v934_v47  ;;  %v905_v50 = vmax.f32 %v3224_v43, %v848_v57  ;;  %1031 = vrot.lane.b32.xlu0 %v3366_v35, %s2557_s17  ;;  %v3374_v24 = vpop.eup %2314  ;;  %v971_v43 = vmul.f32 1.442695, %v935_v16 }
 0x30f   : > { %v904_v58 = vmax.f32 %v3227_v14, %v846_v39 }
 0x310   : > { %v937_v30 = vsub.f32 %v2766_v60, %v905_v50  ;;  %2316 = vpow2.f32 %v969_v52 }
 0x311   : > { %v852_v42 = vpop.permute.xlu0 %851  ;;  %v936_v26 = vsub.f32 %v2776_v63, %v904_v58 }
 0x312   : > { %v850_v59 = vpop.permute.xlu1 %849  ;;  %v975_v34 = vmul.f32 1.442695, %v937_v30  ;;  %1027 = vrot.lane.b32.xlu0 %v3374_v24, %s2557_s17  ;;  %v907_v61 = vmax.f32 %v3237_v15, %v852_v42 }
 0x313   : > { %v906_v48 = vmax.f32 %v3234_v51, %v850_v59  ;;  %v973_v18 = vmul.f32 1.442695, %v936_v26 }
 0x314   : > { %2318 = vpow2.f32 %v975_v34  ;;  %v939_v51 = vsub.f32 %v2784_v1, %v907_v61 }
 0x315   : > { %v938_v60 = vsub.f32 %v2772_v62, %v906_v48  ;;  %2320 = vpow2.f32 %v965_v28  ;;  %v856_v53 = vpop.permute.xlu0 %855 }
 0x316   : > { %v854_v45 = vpop.permute.xlu1 %853  ;;  %v909_v54 = vmax.f32 %v3244_v38, %v856_v53  ;;  %2322 = vpow2.f32 %v971_v43  ;;  %v979_v39 = vmul.f32 1.442695, %v939_v51 }
 0x317   : > { %v977_v14 = vmul.f32 1.442695, %v938_v60  ;;  %v908_v47 = vmax.f32 %v3247_v23, %v854_v45 }
 0x318   : > { %v941_v40 = vsub.f32 %v2782_v0, %v909_v54 }
 0x319   : > { %2324 = vpow2.f32 %v977_v14  ;;  %v860_v15 = vpop.permute.xlu0 %859  ;;  %v940_v0 = vsub.f32 %v2792_v3, %v908_v47 }
 0x31a   : > { %v858_v56 = vpop.permute.xlu1 %857  ;;  %v983_v62 = vmul.f32 1.442695, %v941_v40  ;;  %v3388_v63 = vpop.eup %2316  ;;  %v911_v38 = vmax.f32 %v3257_v22, %v860_v15 }
 0x31b   : > { %v910_v57 = vmax.f32 %v3254_v55, %v858_v56  ;;  %1033 = vrot.lane.b32.xlu1 %v3388_v63, %s2557_s17  ;;  %v981_v3 = vmul.f32 1.442695, %v940_v0 }
 0x31c   : > { %2326 = vpow2.f32 %v983_v62 }
 0x31d   : > { %v942_v52 = vsub.f32 %v2788_v2, %v910_v57  ;;  %2328 = vpow2.f32 %v973_v18  ;;  %v864_v1 = vpop.permute.xlu0 %863  ;;  %v943_v2 = vsub.f32 %v2800_v5, %v911_v38 }
 0x31e   : > { %v862_v23 = vpop.permute.xlu1 %861  ;;  %v3395_v50 = vpop.eup %2318  ;;  %v913_v55 = vmax.f32 %v3264_v33, %v864_v1  ;;  %2330 = vpow2.f32 %v979_v39 }
 0x31f   : > { %v985_v16 = vmul.f32 1.442695, %v942_v52  ;;  %v3398_v30 = vpop.eup %2320  ;;  %1039 = vrot.lane.b32.xlu0 %v3395_v50, %s2557_s17  ;;  %v912_v28 = vmax.f32 %v3267_v25, %v862_v23 }
 0x320   : > { %v945_v22 = vsub.f32 %v2798_v4, %v913_v55  ;;  %1029 = vrot.lane.b32.xlu1 %v3398_v30, %s2557_s17  ;;  %v3407_v33 = vpop.eup %2322  ;;  %v987_v4 = vmul.f32 1.442695, %v943_v2  ;;  %v4385_v2 = vld [vmem:[#allocation5_spill] sm:$0xff] }
 0x321   : > { %2332 = vpow2.f32 %v985_v16  ;;  %v868_v58 = vpop.permute.xlu0 %867  ;;  %v944_v25 = vsub.f32 %v2808_v7, %v912_v28 }
 0x322   : > { %v866_v42 = vpop.permute.xlu1 %865  ;;  %v991_v59 = vmul.f32 1.442695, %v945_v22  ;;  %v915_v5 = vmax.f32 %v3277_v19, %v868_v58 }
 0x323   : > { %v914_v34 = vmax.f32 %v3274_v46, %v866_v42  ;;  %v3410_v48 = vpop.eup %2324  ;;  %1035 = vrot.lane.b32.xlu0 %v3407_v33, %s2557_s17  ;;  %v989_v7 = vmul.f32 1.442695, %v944_v25 }
 0x324   : > { %2334 = vpow2.f32 %v991_v59  ;;  %1041 = vrot.lane.b32.xlu1 %v3410_v48, %s2557_s17 }
 0x325   : > { %v946_v43 = vsub.f32 %v2804_v6, %v914_v34  ;;  %2336 = vpow2.f32 %v981_v3  ;;  %v872_v61 = vpop.permute.xlu0 %871  ;;  %v947_v6 = vsub.f32 %v2816_v9, %v915_v5  ;;  %v4388_v5 = vld [vmem:[#allocation7_spill] sm:$0xff] }
 0x326   : > { %v870_v60 = vpop.permute.xlu1 %869  ;;  %v3419_v46 = vpop.eup %2326  ;;  %v917_v53 = vmax.f32 %v3284_v21, %v872_v61  ;;  %2338 = vpow2.f32 %v987_v4 }
 0x327   : > { %v993_v26 = vmul.f32 1.442695, %v946_v43  ;;  %v3422_v45 = vpop.eup %2328  ;;  %1047 = vrot.lane.b32.xlu0 %v3419_v46, %s2557_s17  ;;  %v916_v14 = vmax.f32 %v3287_v20, %v870_v60 }
 0x328   : > { %v949_v19 = vsub.f32 %v2814_v8, %v917_v53  ;;  %1037 = vrot.lane.b32.xlu1 %v3422_v45, %s2557_s17  ;;  %v3431_v21 = vpop.eup %2330  ;;  %v995_v8 = vmul.f32 1.442695, %v947_v6 }
 0x329   : > { %2340 = vpow2.f32 %v993_v26  ;;  %v876_v54 = vpop.permute.xlu0 %875  ;;  %v948_v20 = vsub.f32 %v2824_v11, %v916_v14 }
 0x32a   : > { %v874_v51 = vpop.permute.xlu1 %873  ;;  %v999_v40 = vmul.f32 1.442695, %v949_v19  ;;  %v919_v9 = vmax.f32 %v3297_v29, %v876_v54  ;;  %v4389_v54 = vld [vmem:[#allocation9_spill] sm:$0xff] }
 0x32b   : > { %v918_v18 = vmax.f32 %v3294_v27, %v874_v51  ;;  %v3434_v47 = vpop.eup %2332  ;;  %1043 = vrot.lane.b32.xlu0 %v3431_v21, %s2557_s17  ;;  %v997_v11 = vmul.f32 1.442695, %v948_v20 }
 0x32c   : > { %2342 = vpow2.f32 %v999_v40  ;;  %1049 = vrot.lane.b32.xlu1 %v3434_v47, %s2557_s17 }
 0x32d   : > { %v950_v15 = vsub.f32 %v2820_v10, %v918_v18  ;;  %2344 = vpow2.f32 %v989_v7  ;;  %v880_v56 = vpop.permute.xlu0 %879  ;;  %v951_v10 = vsub.f32 %v2832_v13, %v919_v9 }
 0x32e   : > { %v878_v62 = vpop.permute.xlu1 %877  ;;  %v3443_v27 = vpop.eup %2334  ;;  %v921_v39 = vmax.f32 %v3304_v17, %v880_v56  ;;  %2346 = vpow2.f32 %v995_v8  ;;  %v4393_v56 = vld [vmem:[#allocation16_spill] sm:$0xff] }
 0x32f   : > { %v1001_v57 = vmul.f32 1.442695, %v950_v15  ;;  %v3446_v38 = vpop.eup %2336  ;;  %1055 = vrot.lane.b32.xlu0 %v3443_v27, %s2557_s17  ;;  %v920_v52 = vmax.f32 %v3307_v41, %v878_v62  ;;  %v4386_v41 = vld [vmem:[#allocation6_spill] sm:$0xff]  ;;  %v4392_v15 = vld [vmem:[#allocation15_spill] sm:$0xff] }
 0x330   : > { %v953_v29 = vsub.f32 %v2830_v12, %v921_v39  ;;  %1045 = vrot.lane.b32.xlu1 %v3446_v38, %s2557_s17  ;;  %v3455_v17 = vpop.eup %2338  ;;  %v1003_v12 = vmul.f32 1.442695, %v951_v10  ;;  %v4395_v10 = vld [vmem:[#allocation11_spill] sm:$0xff] }
 0x331   : > { %2348 = vpow2.f32 %v1001_v57  ;;  %v884_v0 = vpop.permute.xlu0 %883  ;;  %v952_v3 = vsub.f32 %v4386_v41, %v920_v52  ;;  %v4396_v52 = vld [vmem:[#allocation14_spill] sm:$0xff]  ;;  %v4399_v41 = vld [vmem:[#allocation13_spill] sm:$0xff] }
 0x332   : > { %v882_v1 = vpop.permute.xlu1 %881  ;;  %v1007_v23 = vmul.f32 1.442695, %v953_v29  ;;  %v923_v13 = vmax.f32 %v3317_v37, %v884_v0  ;;  %v4387_v37 = vld [vmem:[#allocation8_spill] sm:$0xff] }
 0x333   : > { %v922_v16 = vmax.f32 %v3314_v36, %v882_v1  ;;  %v3458_v55 = vpop.eup %2340  ;;  %1051 = vrot.lane.b32.xlu0 %v3455_v17, %s2557_s17  ;;  %v1005_v25 = vmul.f32 1.442695, %v952_v3 }
 0x334   : > { %2350 = vpow2.f32 %v1007_v23  ;;  %1057 = vrot.lane.b32.xlu1 %v3458_v55, %s2557_s17  ;;  %v955_v4 = vsub.f32 %v4387_v37, %v923_v13 }
 0x335   : > { %v954_v22 = vsub.f32 %v4385_v2, %v922_v16  ;;  %2352 = vpow2.f32 %v997_v11  ;;  %v888_v28 = vpop.permute.xlu0 %887 }
 0x336   : > { %v886_v58 = vpop.permute.xlu1 %885  ;;  %v3467_v36 = vpop.eup %2342  ;;  %v925_v59 = vmax.f32 %v3324_v32, %v888_v28  ;;  %2354 = vpow2.f32 %v1003_v12  ;;  %v1011_v7 = vmul.f32 1.442695, %v955_v4  ;;  %v4397_v12 = vld [vmem:[#allocation17_spill] sm:$0xff] }
 0x337   : > { %v1009_v42 = vmul.f32 1.442695, %v954_v22  ;;  %v3470_v34 = vpop.eup %2344  ;;  %1063 = vrot.lane.b32.xlu0 %v3467_v36, %s2557_s17  ;;  %v924_v61 = vmax.f32 %v3327_v49, %v886_v58  ;;  %v4390_v49 = vld [vmem:[#allocation10_spill] sm:$0xff] }
 0x338   : > { %v957_v43 = vsub.f32 %v4388_v5, %v925_v59  ;;  %1053 = vrot.lane.b32.xlu1 %v3470_v34, %s2557_s17  ;;  %v3479_v32 = vpop.eup %2346 }
 0x339   : > { %2356 = vpow2.f32 %v1009_v42  ;;  %v892_v60 = vpop.permute.xlu0 %891  ;;  %v956_v40 = vsub.f32 %v4390_v49, %v924_v61 }
 0x33a   : > { %v890_v26 = vpop.permute.xlu1 %889  ;;  %v1015_v53 = vmul.f32 1.442695, %v957_v43  ;;  %v927_v14 = vmax.f32 %v3337_v44, %v892_v60  ;;  %v4394_v44 = vld [vmem:[#allocation12_spill] sm:$0xff] }
 0x33b   : > { %v926_v6 = vmax.f32 %v3334_v31, %v890_v26  ;;  %v3482_v19 = vpop.eup %2348  ;;  %1059 = vrot.lane.b32.xlu0 %v3479_v32, %s2557_s17  ;;  %v1013_v11 = vmul.f32 1.442695, %v956_v40 }
 0x33c   : > { %2358 = vpow2.f32 %v1015_v53  ;;  %1065 = vrot.lane.b32.xlu1 %v3482_v19, %s2557_s17  ;;  %v959_v39 = vsub.f32 %v4394_v44, %v927_v14 }
 0x33d   : > { %v958_v51 = vsub.f32 %v4389_v54, %v926_v6  ;;  %2360 = vpow2.f32 %v1005_v25  ;;  %v896_v18 = vpop.permute.xlu0 %895 }
 0x33e   : > { %v894_v8 = vpop.permute.xlu1 %893  ;;  %v3491_v31 = vpop.eup %2350  ;;  %v929_v20 = vmax.f32 %v4392_v15, %v896_v18  ;;  %2362 = vpow2.f32 %v1011_v7  ;;  %v1019_v22 = vmul.f32 1.442695, %v959_v39 }
 0x33f   : > { %4391 = vst [vmem:[#allocation5_spill] sm:$0xff] %v3491_v31  ;;  %v1017_v9 = vmul.f32 1.442695, %v958_v51  ;;  %v928_v62 = vmax.f32 %v4393_v56, %v894_v8  ;;  %v3495_v57 = vpop.eup %2352  ;;  %1071 = vrot.lane.b32.xlu0 %v3491_v31, %s2557_s17 }
 0x340   : > { %v961_v29 = vsub.f32 %v4395_v10, %v929_v20  ;;  %1061 = vrot.lane.b32.xlu1 %v3495_v57, %s2557_s17  ;;  %v3504_v23 = vpop.eup %2354 }
 0x341   : > { %2364 = vpow2.f32 %v1017_v9  ;;  %v960_v0 = vsub.f32 %v4396_v52, %v928_v62 }
 0x342   : > { %v898_v1 = vpop.permute.xlu1 %897  ;;  %v1023_v16 = vmul.f32 1.442695, %v961_v29 }
 0x343   : > { %v930_v13 = vmax.f32 %v4397_v12, %v898_v1  ;;  %v3507_v2 = vpop.eup %2356  ;;  %1067 = vrot.lane.b32.xlu0 %v3504_v23, %s2557_s17  ;;  %v1021_v28 = vmul.f32 1.442695, %v960_v0 }
 0x344   : > { %4398 = vst [vmem:[#allocation6_spill] sm:$0xff] %v3507_v2  ;;  %2366 = vpow2.f32 %v1023_v16  ;;  %1073 = vrot.lane.b32.xlu1 %v3507_v2, %s2557_s17 }
 0x345   : > { %v962_v3 = vsub.f32 %v4399_v41, %v930_v13  ;;  %2368 = vpow2.f32 %v1013_v11 }
 0x346   : > { %v3514_v58 = vpop.eup %2358  ;;  %2370 = vpow2.f32 %v1019_v22 }
 0x347   : > { %4400 = vst [vmem:[#allocation8_spill] sm:$0xff] %v3514_v58  ;;  %v3516_v42 = vpop.eup %2360  ;;  %1079 = vrot.lane.b32.xlu0 %v3514_v58, %s2557_s17  ;;  %v1025_v59 = vmul.f32 1.442695, %v962_v3  ;;  %2372 = vpow2.f32 %v1021_v28 }
 0x348   : > { %4401 = vst [vmem:[#allocation7_spill] sm:$0xff] %v3516_v42  ;;  %1069 = vrot.lane.b32.xlu1 %v3516_v42, %s2557_s17  ;;  %v3522_v37 = vpop.eup %2362 }
 0x349   : > { %4402 = vst [vmem:[#allocation9_spill] sm:$0xff] %v3522_v37  ;;  %2374 = vpow2.f32 %v1025_v59 }
 0x34b   : > { %v3524_v4 = vpop.eup %2364  ;;  %1075 = vrot.lane.b32.xlu0 %v3522_v37, %s2557_s17 }
 0x34c   : > { %4403 = vst [vmem:[#allocation10_spill] sm:$0xff] %v3524_v4  ;;  %1081 = vrot.lane.b32.xlu1 %v3524_v4, %s2557_s17 }
 0x34e   : > { %v3530_v5 = vpop.eup %2366 }
 0x34f   : > { %4404 = vst [vmem:[#allocation15_spill] sm:$0xff] %v3530_v5  ;;  %v3532_v43 = vpop.eup %2368  ;;  %1087 = vrot.lane.b32.xlu0 %v3530_v5, %s2557_s17 }
 0x350   : > { %4405 = vst [vmem:[#allocation16_spill] sm:$0xff] %v3532_v43  ;;  %1077 = vrot.lane.b32.xlu1 %v3532_v43, %s2557_s17  ;;  %v3538_v25 = vpop.eup %2370 }
 0x351   : > { %4406 = vst [vmem:[#allocation12_spill] sm:$0xff] %v3538_v25  ;;  %v3540_v61 = vpop.eup %2372 }
 0x352   : > { %4407 = vst [vmem:[#allocation11_spill] sm:$0xff] %v3540_v61 }
 0x353   : > { %1083 = vrot.lane.b32.xlu0 %v3538_v25, %s2557_s17  ;;  %v3546_v60 = vpop.eup %2374 }
 0x354   : > { %1085 = vrot.lane.b32.xlu1 %v3540_v61, %s2557_s17  ;;  %4408 = vst [vmem:[#allocation14_spill] sm:$0xff] %v3546_v60 }
 0x357   : > { %1089 = vrot.lane.b32.xlu0 %v3546_v60, %s2557_s17 }
 0x380   : > { %v1032_v26 = vpop.permute.xlu0 %1031 }
 0x381   : > { %v3551_v53 = vadd.f32 %v3366_v35, %v1032_v26 }
 0x383   : > { %1127 = vrot.lane.b32.xlu0 %v3551_v53, %s2558_s24 }
 0x384   : > { %v1028_v6 = vpop.permute.xlu0 %1027 }
 0x385   : > { %v3556_v7 = vadd.f32 %v3374_v24, %v1028_v6 }
 0x387   : > { %1123 = vrot.lane.b32.xlu1 %v3556_v7, %s2558_s24 }
 0x38d   : > { %v1034_v14 = vpop.permute.xlu1 %1033 }
 0x38e   : > { %v3561_v54 = vadd.f32 %v3388_v63, %v1034_v14 }
 0x390   : > { %1129 = vrot.lane.b32.xlu1 %v3561_v54, %s2558_s24 }
 0x391   : > { %v1040_v51 = vpop.permute.xlu0 %1039 }
 0x392   : > { %v3566_v49 = vadd.f32 %v3395_v50, %v1040_v51  ;;  %v1030_v40 = vpop.permute.xlu1 %1029 }
 0x393   : > { %v3569_v18 = vadd.f32 %v3398_v30, %v1030_v40 }
 0x394   : > { %1135 = vrot.lane.b32.xlu0 %v3566_v49, %s2558_s24 }
 0x395   : > { %1125 = vrot.lane.b32.xlu1 %v3569_v18, %s2558_s24  ;;  %v1036_v8 = vpop.permute.xlu0 %1035 }
 0x396   : > { %v3576_v9 = vadd.f32 %v3407_v33, %v1036_v8  ;;  %v1042_v15 = vpop.permute.xlu1 %1041 }
 0x397   : > { %v3579_v20 = vadd.f32 %v3410_v48, %v1042_v15 }
 0x398   : > { %1131 = vrot.lane.b32.xlu0 %v3576_v9, %s2558_s24 }
 0x399   : > { %1137 = vrot.lane.b32.xlu1 %v3579_v20, %s2558_s24  ;;  %v1048_v56 = vpop.permute.xlu0 %1047 }
 0x39a   : > { %v3586_v62 = vadd.f32 %v3419_v46, %v1048_v56  ;;  %v1038_v44 = vpop.permute.xlu1 %1037 }
 0x39b   : > { %v3589_v39 = vadd.f32 %v3422_v45, %v1038_v44 }
 0x39c   : > { %1143 = vrot.lane.b32.xlu0 %v3586_v62, %s2558_s24 }
 0x39d   : > { %1133 = vrot.lane.b32.xlu1 %v3589_v39, %s2558_s24  ;;  %v1044_v10 = vpop.permute.xlu0 %1043 }
 0x39e   : > { %v3596_v29 = vadd.f32 %v3431_v21, %v1044_v10  ;;  %v1050_v11 = vpop.permute.xlu1 %1049 }
 0x39f   : > { %v3599_v52 = vadd.f32 %v3434_v47, %v1050_v11 }
 0x3a0   : > { %1139 = vrot.lane.b32.xlu0 %v3596_v29, %s2558_s24 }
 0x3a1   : > { %1145 = vrot.lane.b32.xlu1 %v3599_v52, %s2558_s24  ;;  %v1056_v0 = vpop.permute.xlu0 %1055 }
 0x3a2   : > { %v3606_v1 = vadd.f32 %v3443_v27, %v1056_v0  ;;  %v1046_v16 = vpop.permute.xlu1 %1045 }
 0x3a3   : > { %v3609_v12 = vadd.f32 %v3446_v38, %v1046_v16 }
 0x3a4   : > { %1151 = vrot.lane.b32.xlu0 %v3606_v1, %s2558_s24 }
 0x3a5   : > { %1141 = vrot.lane.b32.xlu1 %v3609_v12, %s2558_s24  ;;  %v1052_v13 = vpop.permute.xlu0 %1051 }
 0x3a6   : > { %v3616_v22 = vadd.f32 %v3455_v17, %v1052_v13  ;;  %v1058_v41 = vpop.permute.xlu1 %1057 }
 0x3a7   : > { %v3619_v3 = vadd.f32 %v3458_v55, %v1058_v41 }
 0x3a8   : > { %1147 = vrot.lane.b32.xlu0 %v3616_v22, %s2558_s24 }
 0x3a9   : > { %1153 = vrot.lane.b32.xlu1 %v3619_v3, %s2558_s24  ;;  %v1064_v28 = vpop.permute.xlu0 %1063 }
 0x3aa   : > { %v3626_v59 = vadd.f32 %v3467_v36, %v1064_v28  ;;  %v1054_v26 = vpop.permute.xlu1 %1053 }
 0x3ab   : > { %v3629_v6 = vadd.f32 %v3470_v34, %v1054_v26 }
 0x3ac   : > { %1159 = vrot.lane.b32.xlu0 %v3626_v59, %s2558_s24 }
 0x3ad   : > { %1149 = vrot.lane.b32.xlu1 %v3629_v6, %s2558_s24  ;;  %v1060_v14 = vpop.permute.xlu0 %1059 }
 0x3ae   : > { %v3636_v51 = vadd.f32 %v3479_v32, %v1060_v14  ;;  %v1066_v40 = vpop.permute.xlu1 %1065 }
 0x3af   : > { %v3639_v8 = vadd.f32 %v3482_v19, %v1066_v40 }
 0x3b0   : > { %1155 = vrot.lane.b32.xlu0 %v3636_v51, %s2558_s24 }
 0x3b1   : > { %1161 = vrot.lane.b32.xlu1 %v3639_v8, %s2558_s24  ;;  %v1072_v15 = vpop.permute.xlu0 %1071 }
 0x3b2   : > { %v3646_v56 = vadd.f32 %v3491_v31, %v1072_v15  ;;  %v1062_v44 = vpop.permute.xlu1 %1061 }
 0x3b3   : > { %v3649_v10 = vadd.f32 %v3495_v57, %v1062_v44 }
 0x3b4   : > { %1167 = vrot.lane.b32.xlu0 %v3646_v56, %s2558_s24 }
 0x3b5   : > { %1157 = vrot.lane.b32.xlu1 %v3649_v10, %s2558_s24  ;;  %v1068_v11 = vpop.permute.xlu0 %1067 }
 0x3b6   : > { %v3656_v0 = vadd.f32 %v3504_v23, %v1068_v11  ;;  %v1074_v16 = vpop.permute.xlu1 %1073 }
 0x3b7   : > { %v3659_v13 = vadd.f32 %v3507_v2, %v1074_v16 }
 0x3b8   : > { %1163 = vrot.lane.b32.xlu0 %v3656_v0, %s2558_s24 }
 0x3b9   : > { %1169 = vrot.lane.b32.xlu1 %v3659_v13, %s2558_s24  ;;  %v1080_v41 = vpop.permute.xlu0 %1079 }
 0x3ba   : > { %v3666_v28 = vadd.f32 %v3514_v58, %v1080_v41  ;;  %v1070_v26 = vpop.permute.xlu1 %1069 }
 0x3bb   : > { %v3669_v14 = vadd.f32 %v3516_v42, %v1070_v26 }
 0x3bc   : > { %1175 = vrot.lane.b32.xlu0 %v3666_v28, %s2558_s24 }
 0x3bd   : > { %1165 = vrot.lane.b32.xlu1 %v3669_v14, %s2558_s24  ;;  %v1076_v40 = vpop.permute.xlu0 %1075 }
 0x3be   : > { %v3676_v15 = vadd.f32 %v3522_v37, %v1076_v40  ;;  %v1082_v44 = vpop.permute.xlu1 %1081 }
 0x3bf   : > { %v3679_v11 = vadd.f32 %v3524_v4, %v1082_v44 }
 0x3c0   : > { %1171 = vrot.lane.b32.xlu0 %v3676_v15, %s2558_s24 }
 0x3c1   : > { %1177 = vrot.lane.b32.xlu1 %v3679_v11, %s2558_s24  ;;  %v1088_v16 = vpop.permute.xlu0 %1087 }
 0x3c2   : > { %v3686_v41 = vadd.f32 %v3530_v5, %v1088_v16  ;;  %v1078_v26 = vpop.permute.xlu1 %1077 }
 0x3c3   : > { %v3689_v58 = vadd.f32 %v3532_v43, %v1078_v26 }
 0x3c4   : > { %1183 = vrot.lane.b32.xlu0 %v3686_v41, %s2558_s24 }
 0x3c5   : > { %1173 = vrot.lane.b32.xlu1 %v3689_v58, %s2558_s24  ;;  %v1084_v40 = vpop.permute.xlu0 %1083 }
 0x3c6   : > { %v3696_v44 = vadd.f32 %v3538_v25, %v1084_v40  ;;  %v1086_v4 = vpop.permute.xlu1 %1085 }
 0x3c7   : > { %v3699_v2 = vadd.f32 %v3540_v61, %v1086_v4 }
 0x3c8   : > { %1179 = vrot.lane.b32.xlu0 %v3696_v44, %s2558_s24 }
 0x3c9   : > { %1181 = vrot.lane.b32.xlu1 %v3699_v2, %s2558_s24  ;;  %v1090_v16 = vpop.permute.xlu0 %1089 }
 0x3ca   : > { %v3706_v26 = vadd.f32 %v3546_v60, %v1090_v16 }
 0x3cc   : > { %1185 = vrot.lane.b32.xlu0 %v3706_v26, %s2558_s24 }
 0x3f5   : > { %v1128_v5 = vpop.permute.xlu0 %1127 }
 0x3f6   : > { %v3711_v40 = vadd.f32 %v1128_v5, %v3551_v53 }
 0x3f8   : > { %1223 = vrot.lane.b32.xlu0 %v3711_v40, %s2559_s26 }
 0x3f9   : > { %v1124_v4 = vpop.permute.xlu1 %1123 }
 0x3fa   : > { %v3716_v61 = vadd.f32 %v1124_v4, %v3556_v7 }
 0x3fc   : > { %1219 = vrot.lane.b32.xlu1 %v3716_v61, %s2559_s26 }
 0x402   : > { %v1130_v25 = vpop.permute.xlu1 %1129 }
 0x403   : > { %v3721_v16 = vadd.f32 %v1130_v25, %v3561_v54 }
 0x405   : > { %1225 = vrot.lane.b32.xlu1 %v3721_v16, %s2559_s26 }
 0x406   : > { %v1136_v60 = vpop.permute.xlu0 %1135 }
 0x407   : > { %v3726_v5 = vadd.f32 %v1136_v60, %v3566_v49  ;;  %v1126_v53 = vpop.permute.xlu1 %1125 }
 0x408   : > { %v3729_v43 = vadd.f32 %v1126_v53, %v3569_v18 }
 0x409   : > { %1231 = vrot.lane.b32.xlu0 %v3726_v5, %s2559_s26 }
 0x40a   : > { %1221 = vrot.lane.b32.xlu1 %v3729_v43, %s2559_s26  ;;  %v1132_v7 = vpop.permute.xlu0 %1131 }
 0x40b   : > { %v3736_v25 = vadd.f32 %v1132_v7, %v3576_v9  ;;  %v1138_v54 = vpop.permute.xlu1 %1137 }
 0x40c   : > { %v3739_v4 = vadd.f32 %v1138_v54, %v3579_v20 }
 0x40d   : > { %1227 = vrot.lane.b32.xlu0 %v3736_v25, %s2559_s26 }
 0x40e   : > { %1233 = vrot.lane.b32.xlu1 %v3739_v4, %s2559_s26  ;;  %v1144_v60 = vpop.permute.xlu0 %1143 }
 0x40f   : > { %v3746_v49 = vadd.f32 %v1144_v60, %v3586_v62  ;;  %v1134_v18 = vpop.permute.xlu1 %1133 }
 0x410   : > { %v3749_v53 = vadd.f32 %v1134_v18, %v3589_v39 }
 0x411   : > { %1239 = vrot.lane.b32.xlu0 %v3746_v49, %s2559_s26 }
 0x412   : > { %1229 = vrot.lane.b32.xlu1 %v3749_v53, %s2559_s26  ;;  %v1140_v9 = vpop.permute.xlu0 %1139 }
 0x413   : > { %v3756_v20 = vadd.f32 %v1140_v9, %v3596_v29  ;;  %v1146_v7 = vpop.permute.xlu1 %1145 }
 0x414   : > { %v3759_v54 = vadd.f32 %v1146_v7, %v3599_v52 }
 0x415   : > { %1235 = vrot.lane.b32.xlu0 %v3756_v20, %s2559_s26 }
 0x416   : > { %1241 = vrot.lane.b32.xlu1 %v3759_v54, %s2559_s26  ;;  %v1152_v62 = vpop.permute.xlu0 %1151 }
 0x417   : > { %v3766_v39 = vadd.f32 %v1152_v62, %v3606_v1  ;;  %v1142_v60 = vpop.permute.xlu1 %1141 }
 0x418   : > { %v3769_v18 = vadd.f32 %v1142_v60, %v3609_v12 }
 0x419   : > { %1247 = vrot.lane.b32.xlu0 %v3766_v39, %s2559_s26 }
 0x41a   : > { %1237 = vrot.lane.b32.xlu1 %v3769_v18, %s2559_s26  ;;  %v1148_v29 = vpop.permute.xlu0 %1147 }
 0x41b   : > { %v3776_v52 = vadd.f32 %v1148_v29, %v3616_v22  ;;  %v1154_v9 = vpop.permute.xlu1 %1153 }
 0x41c   : > { %v3779_v7 = vadd.f32 %v1154_v9, %v3619_v3 }
 0x41d   : > { %1243 = vrot.lane.b32.xlu0 %v3776_v52, %s2559_s26 }
 0x41e   : > { %1249 = vrot.lane.b32.xlu1 %v3779_v7, %s2559_s26  ;;  %v1160_v1 = vpop.permute.xlu0 %1159 }
 0x41f   : > { %v3786_v12 = vadd.f32 %v1160_v1, %v3626_v59  ;;  %v1150_v62 = vpop.permute.xlu1 %1149 }
 0x420   : > { %v3789_v60 = vadd.f32 %v1150_v62, %v3629_v6 }
 0x421   : > { %1255 = vrot.lane.b32.xlu0 %v3786_v12, %s2559_s26 }
 0x422   : > { %1245 = vrot.lane.b32.xlu1 %v3789_v60, %s2559_s26  ;;  %v1156_v22 = vpop.permute.xlu0 %1155 }
 0x423   : > { %v3796_v3 = vadd.f32 %v1156_v22, %v3636_v51  ;;  %v1162_v29 = vpop.permute.xlu1 %1161 }
 0x424   : > { %v3799_v9 = vadd.f32 %v1162_v29, %v3639_v8 }
 0x425   : > { %1251 = vrot.lane.b32.xlu0 %v3796_v3, %s2559_s26 }
 0x426   : > { %1257 = vrot.lane.b32.xlu1 %v3799_v9, %s2559_s26  ;;  %v1168_v59 = vpop.permute.xlu0 %1167 }
 0x427   : > { %v3806_v6 = vadd.f32 %v1168_v59, %v3646_v56  ;;  %v1158_v1 = vpop.permute.xlu1 %1157 }
 0x428   : > { %v3809_v62 = vadd.f32 %v1158_v1, %v3649_v10 }
 0x429   : > { %1263 = vrot.lane.b32.xlu0 %v3806_v6, %s2559_s26 }
 0x42a   : > { %1253 = vrot.lane.b32.xlu1 %v3809_v62, %s2559_s26  ;;  %v1164_v51 = vpop.permute.xlu0 %1163 }
 0x42b   : > { %v3816_v8 = vadd.f32 %v1164_v51, %v3656_v0  ;;  %v1170_v22 = vpop.permute.xlu1 %1169 }
 0x42c   : > { %v3819_v29 = vadd.f32 %v1170_v22, %v3659_v13 }
 0x42d   : > { %1259 = vrot.lane.b32.xlu0 %v3816_v8, %s2559_s26 }
 0x42e   : > { %1265 = vrot.lane.b32.xlu1 %v3819_v29, %s2559_s26  ;;  %v1176_v56 = vpop.permute.xlu0 %1175 }
 0x42f   : > { %v3826_v10 = vadd.f32 %v1176_v56, %v3666_v28  ;;  %v1166_v59 = vpop.permute.xlu1 %1165 }
 0x430   : > { %v3829_v1 = vadd.f32 %v1166_v59, %v3669_v14 }
 0x431   : > { %1271 = vrot.lane.b32.xlu0 %v3826_v10, %s2559_s26 }
 0x432   : > { %1261 = vrot.lane.b32.xlu1 %v3829_v1, %s2559_s26  ;;  %v1172_v0 = vpop.permute.xlu0 %1171 }
 0x433   : > { %v3836_v13 = vadd.f32 %v1172_v0, %v3676_v15  ;;  %v1178_v51 = vpop.permute.xlu1 %1177 }
 0x434   : > { %v3839_v22 = vadd.f32 %v1178_v51, %v3679_v11 }
 0x435   : > { %1267 = vrot.lane.b32.xlu0 %v3836_v13, %s2559_s26 }
 0x436   : > { %1273 = vrot.lane.b32.xlu1 %v3839_v22, %s2559_s26  ;;  %v1184_v28 = vpop.permute.xlu0 %1183 }
 0x437   : > { %v3846_v14 = vadd.f32 %v1184_v28, %v3686_v41  ;;  %v1174_v56 = vpop.permute.xlu1 %1173 }
 0x438   : > { %v3849_v59 = vadd.f32 %v1174_v56, %v3689_v58  ;;  %v1509_v56 = vld [vmem:[%s4339_s2 + $0x10] sm:$0xff] }
 0x439   : > { %1279 = vrot.lane.b32.xlu0 %v3846_v14, %s2559_s26 }
 0x43a   : > { %1269 = vrot.lane.b32.xlu1 %v3849_v59, %s2559_s26  ;;  %v1180_v15 = vpop.permute.xlu0 %1179 }
 0x43b   : > { %v3856_v11 = vadd.f32 %v1180_v15, %v3696_v44  ;;  %v1182_v0 = vpop.permute.xlu1 %1181  ;;  %v1507_v44 = vld [vmem:[%s4339_s2] sm:$0xff] }
 0x43c   : > { %v3859_v51 = vadd.f32 %v1182_v0, %v3699_v2  ;;  %v1508_v2 = vld [vmem:[%s4339_s2 + $0x8] sm:$0xff]  ;;  %v1511_v0 = vld [vmem:[%s4339_s2 + $0x20] sm:$0xff] }
 0x43d   : > { %1275 = vrot.lane.b32.xlu0 %v3856_v11, %s2559_s26  ;;  %v2211_v28 = vpack.c.bf16 %v1508_v2, %v1507_v44  ;;  %v1513_v44 = vld [vmem:[%s4339_s2 + $0x30] sm:$0xff] }
 0x43e   : > { %1277 = vrot.lane.b32.xlu1 %v3859_v51, %s2559_s26  ;;  %v1186_v58 = vpop.permute.xlu0 %1185 }
 0x43f   : > { %v3866_v41 = vadd.f32 %v1186_v58, %v3706_v26  ;;  %2212 = vmatprep.subr.bf16.mxu1 %v2211_v28  ;;  %v1510_v26 = vld [vmem:[%s4339_s2 + $0x18] sm:$0xff]  ;;  %v1512_v58 = vld [vmem:[%s4339_s2 + $0x28] sm:$0xff] }
 0x440   : > { %2214 = vmatpush3.bf16.msra.mxu1 %v2211_v28  ;;  %v2215_v15 = vpack.c.bf16 %v1510_v26, %v1509_v56  ;;  %v2219_v2 = vpack.c.bf16 %v1512_v58, %v1511_v0  ;;  %v1514_v28 = vld [vmem:[%s4339_s2 + $0x38] sm:$0xff]  ;;  %v1516_v0 = vld [vmem:[%s4339_s2 + $0x48] sm:$0xff] }
 0x441   : > { %1281 = vrot.lane.b32.xlu0 %v3866_v41, %s2559_s26  ;;  %v2223_v56 = vpack.c.bf16 %v1514_v28, %v1513_v44  ;;  %v1520_v28 = vld [vmem:[%s4339_s2 + $0x68] sm:$0xff] }
 0x442   : > { %2216 = vmatprep.subr.bf16.mxu1 %v2215_v15 }
 0x444   : > { %2218 = vmatpush3.bf16.msra.mxu1 %v2215_v15  ;;  %v1515_v15 = vld [vmem:[%s4339_s2 + $0x40] sm:$0xff] }
 0x445   : > { %2220 = vmatprep.subr.bf16.mxu1 %v2219_v2 }
 0x448   : > { %2222 = vmatpush3.bf16.msra.mxu1 %v2219_v2  ;;  %v1519_v2 = vld [vmem:[%s4339_s2 + $0x60] sm:$0xff] }
 0x449   : > { %2224 = vmatprep.subr.bf16.mxu1 %v2223_v56 }
 0x44c   : > { %2226 = vmatpush3.bf16.msra.mxu1 %v2223_v56  ;;  %v2235_v56 = vpack.c.bf16 %v1520_v28, %v1519_v2 }
 0x46a   : > { %v1224_v26 = vpop.permute.xlu0 %1223 }
 0x46b   : > { %v3895_v37 = vadd.f32 %v1224_v26, %v3711_v40  ;;  %v2227_v40 = vpack.c.bf16 %v1516_v0, %v1515_v15  ;;  %v1521_v0 = vld [vmem:[%s4339_s2 + $0x70] sm:$0xff] }
 0x46d   : > { %1319 = vrot.lane.b32.xlu0 %v3895_v37, %s2560_s11  ;;  %2228 = vmatprep.subr.bf16.mxu1 %v2227_v40 }
 0x46e   : > { %v1220_v42 = vpop.permute.xlu1 %1219  ;;  %2230 = vmatpush3.bf16.msra.mxu1 %v2227_v40  ;;  %v1522_v40 = vld [vmem:[%s4339_s2 + $0x78] sm:$0xff] }
 0x46f   : > { %v3900_v31 = vadd.f32 %v1220_v42, %v3716_v61  ;;  %v1517_v42 = vld [vmem:[%s4339_s2 + $0x50] sm:$0xff]  ;;  %v1518_v61 = vld [vmem:[%s4339_s2 + $0x58] sm:$0xff] }
 0x470   : > { %v2231_v58 = vpack.c.bf16 %v1518_v61, %v1517_v42  ;;  %v2239_v61 = vpack.c.bf16 %v1522_v40, %v1521_v0 }
 0x471   : > { %1315 = vrot.lane.b32.xlu1 %v3900_v31, %s2560_s11 }
 0x472   : > { %2232 = vmatprep.subr.bf16.mxu1 %v2231_v58 }
 0x473   : > { %2234 = vmatpush3.bf16.msra.mxu1 %v2231_v58 }
 0x474   : > { %2236 = vmatprep.subr.bf16.mxu1 %v2235_v56 }
 0x477   : > { %v1226_v44 = vpop.permute.xlu1 %1225  ;;  %2238 = vmatpush3.bf16.msra.mxu1 %v2235_v56 }
 0x478   : > { %2240 = vmatprep.subr.bf16.mxu1 %v2239_v61  ;;  %v3937_v56 = vadd.f32 %v1226_v44, %v3721_v16 }
 0x47b   : > { %v1232_v26 = vpop.permute.xlu0 %1231  ;;  %2242 = vmatpush3.bf16.msra.mxu1 %v2239_v61 }
 0x47c   : > { %v1222_v15 = vpop.permute.xlu1 %1221 }
 0x47d   : > { %v3929_v42 = vadd.f32 %v1222_v15, %v3729_v43  ;;  %v3944_v15 = vadd.f32 %v1232_v26, %v3726_v5 }
 0x47f   : > { %1317 = vrot.lane.b32.xlu1 %v3929_v42, %s2560_s11  ;;  %v1228_v58 = vpop.permute.xlu0 %1227 }
 0x480   : > { %v3934_v2 = vadd.f32 %v1228_v58, %v3736_v25  ;;  %v1234_v28 = vpop.permute.xlu1 %1233 }
 0x481   : > { %v3957_v61 = vadd.f32 %v1234_v28, %v3739_v4 }
 0x482   : > { %1323 = vrot.lane.b32.xlu0 %v3934_v2, %s2560_s11 }
 0x483   : > { %1321 = vrot.lane.b32.xlu1 %v3937_v56, %s2560_s11  ;;  %v1240_v43 = vpop.permute.xlu0 %1239 }
 0x484   : > { %v1230_v0 = vpop.permute.xlu1 %1229 }
 0x485   : > { %v3947_v40 = vadd.f32 %v1230_v0, %v3749_v53  ;;  %v3964_v53 = vadd.f32 %v1240_v43, %v3746_v49 }
 0x486   : > { %1327 = vrot.lane.b32.xlu0 %v3944_v15, %s2560_s11 }
 0x487   : > { %1325 = vrot.lane.b32.xlu1 %v3947_v40, %s2560_s11  ;;  %v1236_v16 = vpop.permute.xlu0 %1235 }
 0x488   : > { %v3954_v25 = vadd.f32 %v1236_v16, %v3756_v20  ;;  %v1242_v44 = vpop.permute.xlu1 %1241 }
 0x489   : > { %v3977_v0 = vadd.f32 %v1242_v44, %v3759_v54 }
 0x48a   : > { %1331 = vrot.lane.b32.xlu0 %v3954_v25, %s2560_s11 }
 0x48b   : > { %1329 = vrot.lane.b32.xlu1 %v3957_v61, %s2560_s11  ;;  %v1248_v5 = vpop.permute.xlu0 %1247 }
 0x48c   : > { %v1238_v26 = vpop.permute.xlu1 %1237 }
 0x48d   : > { %v3967_v58 = vadd.f32 %v1238_v26, %v3769_v18  ;;  %v3984_v18 = vadd.f32 %v1248_v5, %v3766_v39 }
 0x48e   : > { %1335 = vrot.lane.b32.xlu0 %v3964_v53, %s2560_s11 }
 0x48f   : > { %1333 = vrot.lane.b32.xlu1 %v3967_v58, %s2560_s11  ;;  %v1244_v4 = vpop.permute.xlu0 %1243 }
 0x490   : > { %v3974_v20 = vadd.f32 %v1244_v4, %v3776_v52  ;;  %v1250_v28 = vpop.permute.xlu1 %1249 }
 0x491   : > { %v3997_v26 = vadd.f32 %v1250_v28, %v3779_v7 }
 0x492   : > { %1339 = vrot.lane.b32.xlu0 %v3974_v20, %s2560_s11 }
 0x493   : > { %1337 = vrot.lane.b32.xlu1 %v3977_v0, %s2560_s11  ;;  %v1256_v49 = vpop.permute.xlu0 %1255 }
 0x494   : > { %v1246_v43 = vpop.permute.xlu1 %1245 }
 0x495   : > { %v3987_v16 = vadd.f32 %v1246_v43, %v3789_v60  ;;  %v4004_v60 = vadd.f32 %v1256_v49, %v3786_v12 }
 0x496   : > { %1343 = vrot.lane.b32.xlu0 %v3984_v18, %s2560_s11 }
 0x497   : > { %1341 = vrot.lane.b32.xlu1 %v3987_v16, %s2560_s11  ;;  %v1252_v54 = vpop.permute.xlu0 %1251 }
 0x498   : > { %v3994_v52 = vadd.f32 %v1252_v54, %v3796_v3  ;;  %v1258_v44 = vpop.permute.xlu1 %1257 }
 0x499   : > { %v4017_v43 = vadd.f32 %v1258_v44, %v3799_v9 }
 0x49a   : > { %1347 = vrot.lane.b32.xlu0 %v3994_v52, %s2560_s11 }
 0x49b   : > { %1345 = vrot.lane.b32.xlu1 %v3997_v26, %s2560_s11  ;;  %v1264_v39 = vpop.permute.xlu0 %1263 }
 0x49c   : > { %v1254_v5 = vpop.permute.xlu1 %1253 }
 0x49d   : > { %v4007_v4 = vadd.f32 %v1254_v5, %v3809_v62  ;;  %v4024_v62 = vadd.f32 %v1264_v39, %v3806_v6 }
 0x49e   : > { %1351 = vrot.lane.b32.xlu0 %v4004_v60, %s2560_s11 }
 0x49f   : > { %1349 = vrot.lane.b32.xlu1 %v4007_v4, %s2560_s11  ;;  %v1260_v7 = vpop.permute.xlu0 %1259 }
 0x4a0   : > { %v4014_v3 = vadd.f32 %v1260_v7, %v3816_v8  ;;  %v1266_v28 = vpop.permute.xlu1 %1265 }
 0x4a1   : > { %v4037_v5 = vadd.f32 %v1266_v28, %v3819_v29 }
 0x4a2   : > { %1355 = vrot.lane.b32.xlu0 %v4014_v3, %s2560_s11 }
 0x4a3   : > { %1353 = vrot.lane.b32.xlu1 %v4017_v43, %s2560_s11  ;;  %v1272_v12 = vpop.permute.xlu0 %1271 }
 0x4a4   : > { %v1262_v49 = vpop.permute.xlu1 %1261 }
 0x4a5   : > { %v4027_v54 = vadd.f32 %v1262_v49, %v3829_v1  ;;  %v4044_v1 = vadd.f32 %v1272_v12, %v3826_v10 }
 0x4a6   : > { %1359 = vrot.lane.b32.xlu0 %v4024_v62, %s2560_s11 }
 0x4a7   : > { %1357 = vrot.lane.b32.xlu1 %v4027_v54, %s2560_s11  ;;  %v1268_v9 = vpop.permute.xlu0 %1267 }
 0x4a8   : > { %v4034_v8 = vadd.f32 %v1268_v9, %v3836_v13  ;;  %v1274_v44 = vpop.permute.xlu1 %1273 }
 0x4a9   : > { %v4057_v28 = vadd.f32 %v1274_v44, %v3839_v22 }
 0x4aa   : > { %1363 = vrot.lane.b32.xlu0 %v4034_v8, %s2560_s11 }
 0x4ab   : > { %1361 = vrot.lane.b32.xlu1 %v4037_v5, %s2560_s11  ;;  %v1280_v6 = vpop.permute.xlu0 %1279 }
 0x4ac   : > { %v1270_v39 = vpop.permute.xlu1 %1269  ;;  %v4064_v10 = vadd.f32 %v1280_v6, %v3846_v14 }
 0x4ad   : > { %v4047_v7 = vadd.f32 %v1270_v39, %v3849_v59 }
 0x4ae   : > { %1367 = vrot.lane.b32.xlu0 %v4044_v1, %s2560_s11 }
 0x4af   : > { %1365 = vrot.lane.b32.xlu1 %v4047_v7, %s2560_s11  ;;  %v1276_v29 = vpop.permute.xlu0 %1275 }
 0x4b0   : > { %v4054_v13 = vadd.f32 %v1276_v29, %v3856_v11  ;;  %v1278_v49 = vpop.permute.xlu1 %1277 }
 0x4b1   : > { %v4067_v59 = vadd.f32 %v1278_v49, %v3859_v51  ;;  %v2440_v49 = vld [vmem:[%s2688_s18] sm:$0xff] }
 0x4b2   : > { %1371 = vrot.lane.b32.xlu0 %v4054_v13, %s2560_s11 }
 0x4b3   : > { %1369 = vrot.lane.b32.xlu1 %v4057_v28, %s2560_s11  ;;  %4409 = vst [vmem:[#allocation17_spill] sm:$0xff] %v4067_v59  ;;  %v1282_v12 = vpop.permute.xlu0 %1281 }
 0x4b4   : > { %v4074_v22 = vadd.f32 %v1282_v12, %v3866_v41 }
 0x4b6   : > { %1375 = vrot.lane.b32.xlu0 %v4064_v10, %s2560_s11  ;;  %4410 = vst [vmem:[#allocation13_spill] sm:$0xff] %v4074_v22 }
 0x4b7   : > { %1373 = vrot.lane.b32.xlu1 %v4067_v59, %s2560_s11 }
 0x4bb   : > { %1377 = vrot.lane.b32.xlu1 %v4074_v22, %s2560_s11 }
 0x4df   : > { %v1320_v51 = vpop.permute.xlu0 %1319 }
 0x4e0   : > { %v1381_v9 = vadd.f32 %v1320_v51, %v3895_v37 }
 0x4e3   : > { %v1316_v11 = vpop.permute.xlu1 %1315 }
 0x4e4   : > { %v1379_v14 = vadd.f32 %v1316_v11, %v3900_v31 }
 0x4e6   : > { %2376 = vrcp.f32 %v1379_v14 }
 0x4e7   : > { %2378 = vrcp.f32 %v1381_v9 }
 0x4f0   : > { %v2377_v44 = vpop.eup %2376 }
 0x4f1   : > { %v1318_v6 = vpop.permute.xlu1 %1317  ;;  %v1443_v39 = vmul.f32 %v2377_v44, %v3374_v24  ;;  %v2379_v51 = vpop.eup %2378 }
 0x4f2   : > { %v1380_v29 = vadd.f32 %v1318_v6, %v3929_v42 }
 0x4f3   : > { %v1475_v41 = vmul.f32 %v2440_v49, %v1443_v39 }
 0x4f4   : > { %2380 = vrcp.f32 %v1380_v29  ;;  %v1324_v12 = vpop.permute.xlu0 %1323  ;;  %v2441_v29 = vld [vmem:[%s2688_s18 + $0x8] sm:$0xff] }
 0x4f5   : > { %v1383_v22 = vadd.f32 %v1324_v12, %v3934_v2  ;;  %v1322_v59 = vpop.permute.xlu1 %1321  ;;  %2163 = vmatprep.mubr.f32.mxu1 %v1475_v41  ;;  %v2442_v12 = vld [vmem:[%s2688_s18 + $0x10] sm:$0xff] }
 0x4f6   : > { %v1382_v31 = vadd.f32 %v1322_v59, %v3937_v56  ;;  %v1445_v59 = vmul.f32 %v2379_v51, %v3366_v35  ;;  %v2444_v51 = vld [vmem:[%s2688_s18 + $0x18] sm:$0xff] }
 0x4f7   : > { %2382 = vrcp.f32 %v1383_v22 }
 0x4f8   : > { %2384 = vrcp.f32 %v1382_v31  ;;  %v1328_v37 = vpop.permute.xlu0 %1327 }
 0x4f9   : > { %v1385_v11 = vadd.f32 %v1328_v37, %v3944_v15  ;;  %v1326_v14 = vpop.permute.xlu1 %1325  ;;  %v2443_v37 = vld [vmem:[%s2688_s18 + $0x20] sm:$0xff] }
 0x4fa   : > { %v1384_v24 = vadd.f32 %v1326_v14, %v3947_v40 }
 0x4fb   : > { %2386 = vrcp.f32 %v1385_v11 }
 0x4fc   : > { %2388 = vrcp.f32 %v1384_v24  ;;  %v1332_v42 = vpop.permute.xlu0 %1331 }
 0x4fd   : > { %v1387_v9 = vadd.f32 %v1332_v42, %v3954_v25  ;;  %v1330_v2 = vpop.permute.xlu1 %1329 }
 0x4fe   : > { %v2381_v44 = vpop.eup %2380  ;;  %v1386_v56 = vadd.f32 %v1330_v2, %v3957_v61  ;;  %v1477_v61 = vmul.f32 %v2442_v12, %v1445_v59  ;;  %v2448_v12 = vld [vmem:[%s2688_s18 + $0x38] sm:$0xff] }
 0x4ff   : > { %2390 = vrcp.f32 %v1387_v9  ;;  %v1444_v15 = vmul.f32 %v2381_v44, %v3398_v30  ;;  %v2445_v44 = vld [vmem:[%s2688_s18 + $0x30] sm:$0xff] }
 0x500   : > { %2392 = vrcp.f32 %v1386_v56  ;;  %v1336_v22 = vpop.permute.xlu0 %1335 }
 0x501   : > { %v2383_v40 = vpop.eup %2382  ;;  %v1389_v6 = vadd.f32 %v1336_v22, %v3964_v53  ;;  %v1334_v39 = vpop.permute.xlu1 %1333  ;;  %v1476_v49 = vmul.f32 %v2441_v29, %v1444_v15  ;;  %v2446_v22 = vld [vmem:[%s2688_s18 + $0x28] sm:$0xff]  ;;  %v2447_v29 = vld [vmem:[%s2688_s18 + $0x40] sm:$0xff] }
 0x502   : > { %v2385_v25 = vpop.eup %2384  ;;  %v1388_v41 = vadd.f32 %v1334_v39, %v3967_v58  ;;  %v1447_v35 = vmul.f32 %v2383_v40, %v3407_v33 }
 0x503   : > { %2394 = vrcp.f32 %v1389_v6  ;;  %2164 = vmatmul.mubr.f32.vlgmr.msra.gmra.mrb[0].mxu1 %v1476_v49  ;;  %v1446_v30 = vmul.f32 %v2385_v25, %v3388_v63 }
 0x504   : > { %2396 = vrcp.f32 %v1388_v41  ;;  %2166 = vmatprep.mubr.f32.mxu1 %v1477_v61  ;;  %v1340_v31 = vpop.permute.xlu0 %1339  ;;  %v1479_v53 = vmul.f32 %v2443_v37, %v1447_v35 }
 0x505   : > { %v2387_v11 = vpop.eup %2386  ;;  %v1391_v14 = vadd.f32 %v1340_v31, %v3974_v20  ;;  %v1338_v24 = vpop.permute.xlu1 %1337  ;;  %v1478_v58 = vmul.f32 %v2444_v51, %v1446_v30  ;;  %v2449_v31 = vld [vmem:[%s2688_s18 + $0x50] sm:$0xff] }
 0x506   : > { %v2389_v42 = vpop.eup %2388  ;;  %v1390_v33 = vadd.f32 %v1338_v24, %v3977_v0  ;;  %v1449_v9 = vmul.f32 %v2387_v11, %v3395_v50 }
 0x507   : > { %2398 = vrcp.f32 %v1391_v14  ;;  %2167 = vmatmul.mubr.f32.gmra.mrb[2].mxu1 %v1478_v58  ;;  %v1448_v63 = vmul.f32 %v2389_v42, %v3422_v45  ;;  %v2450_v14 = vld [vmem:[%s2688_s18 + $0x48] sm:$0xff]  ;;  %v2451_v42 = vld [vmem:[%s2688_s18 + $0x60] sm:$0xff] }
 0x508   : > { %2400 = vrcp.f32 %v1390_v33  ;;  %2169 = vmatprep.mubr.f32.mxu1 %v1479_v53  ;;  %v1344_v2 = vpop.permute.xlu0 %1343  ;;  %v1481_v56 = vmul.f32 %v2445_v44, %v1449_v9 }
 0x509   : > { %v2391_v20 = vpop.eup %2390  ;;  %v1393_v59 = vadd.f32 %v1344_v2, %v3984_v18  ;;  %v1342_v15 = vpop.permute.xlu1 %1341  ;;  %v1480_v40 = vmul.f32 %v2446_v22, %v1448_v63  ;;  %v2452_v2 = vld [vmem:[%s2688_s18 + $0x58] sm:$0xff] }
 0x50a   : > { %v2393_v0 = vpop.eup %2392  ;;  %v1392_v50 = vadd.f32 %v1342_v15, %v3987_v16  ;;  %v1451_v6 = vmul.f32 %v2391_v20, %v3431_v21 }
 0x50b   : > { %2402 = vrcp.f32 %v1393_v59  ;;  %2170 = vmatmul.mubr.f32.gmra.mrb[4].mxu1 %v1480_v40  ;;  %v1450_v45 = vmul.f32 %v2393_v0, %v3410_v48  ;;  %v2453_v59 = vld [vmem:[%s2688_s18 + $0x70] sm:$0xff]  ;;  %v2454_v0 = vld [vmem:[%s2688_s18 + $0x68] sm:$0xff] }
 0x50c   : > { %2404 = vrcp.f32 %v1392_v50  ;;  %2172 = vmatprep.mubr.f32.mxu1 %v1481_v56  ;;  %v1348_v39 = vpop.permute.xlu0 %1347  ;;  %v1483_v49 = vmul.f32 %v2447_v29, %v1451_v6 }
 0x50d   : > { %v2395_v18 = vpop.eup %2394  ;;  %v1395_v25 = vadd.f32 %v1348_v39, %v3994_v52  ;;  %v1346_v41 = vpop.permute.xlu1 %1345  ;;  %v1482_v61 = vmul.f32 %v2448_v12, %v1450_v45  ;;  %v2455_v39 = vld [vmem:[%s2688_s18 + $0x80] sm:$0xff] }
 0x50e   : > { %v2397_v16 = vpop.eup %2396  ;;  %v1394_v21 = vadd.f32 %v1346_v41, %v3997_v26  ;;  %v1453_v35 = vmul.f32 %v2395_v18, %v3419_v46 }
 0x50f   : > { %2406 = vrcp.f32 %v1395_v25  ;;  %2173 = vmatmul.mubr.f32.gmra.mrb[6].mxu1 %v1482_v61  ;;  %v1452_v48 = vmul.f32 %v2397_v16, %v3446_v38  ;;  %v2456_v25 = vld [vmem:[%s2688_s18 + $0x78] sm:$0xff]  ;;  %v2457_v16 = vld [vmem:[%s2688_s18 + $0x90] sm:$0xff] }
 0x510   : > { %2408 = vrcp.f32 %v1394_v21  ;;  %2175 = vmatprep.mubr.f32.mxu1 %v1483_v49  ;;  %v1352_v30 = vpop.permute.xlu0 %1351  ;;  %v1485_v37 = vmul.f32 %v2449_v31, %v1453_v35 }
 0x511   : > { %v2399_v52 = vpop.eup %2398  ;;  %v1397_v53 = vadd.f32 %v1352_v30, %v4004_v60  ;;  %v1350_v11 = vpop.permute.xlu1 %1349  ;;  %v1484_v24 = vmul.f32 %v2450_v14, %v1452_v48  ;;  %v2458_v30 = vld [vmem:[%s2688_s18 + $0x88] sm:$0xff] }
 0x512   : > { %v2401_v26 = vpop.eup %2400  ;;  %v1396_v46 = vadd.f32 %v1350_v11, %v4007_v4  ;;  %v1455_v51 = vmul.f32 %v2399_v52, %v3455_v17 }
 0x513   : > { %2410 = vrcp.f32 %v1397_v53  ;;  %2176 = vmatmul.mubr.f32.gmra.mrb[8].mxu1 %v1484_v24  ;;  %v1454_v38 = vmul.f32 %v2401_v26, %v3434_v47  ;;  %v2459_v53 = vld [vmem:[%s2688_s18 + $0xa0] sm:$0xff]  ;;  %v2460_v26 = vld [vmem:[%s2688_s18 + $0x98] sm:$0xff] }
 0x514   : > { %2412 = vrcp.f32 %v1396_v46  ;;  %2178 = vmatprep.mubr.f32.mxu1 %v1485_v37  ;;  %v1356_v58 = vpop.permute.xlu0 %1355  ;;  %v1487_v33 = vmul.f32 %v2451_v42, %v1455_v51  ;;  %v4411_v51 = vld [vmem:[#allocation5_spill] sm:$0xff] }
 0x515   : > { %v2403_v60 = vpop.eup %2402  ;;  %v1399_v9 = vadd.f32 %v1356_v58, %v4014_v3  ;;  %v1354_v63 = vpop.permute.xlu1 %1353  ;;  %v1486_v44 = vmul.f32 %v2452_v2, %v1454_v38  ;;  %v2462_v2 = vld [vmem:[%s2688_s18 + $0xa8] sm:$0xff] }
 0x516   : > { %v2405_v4 = vpop.eup %2404  ;;  %v1398_v17 = vadd.f32 %v1354_v63, %v4017_v43  ;;  %v1457_v56 = vmul.f32 %v2403_v60, %v3443_v27 }
 0x517   : > { %2414 = vrcp.f32 %v1399_v9  ;;  %2179 = vmatmul.mubr.f32.gmra.mrb[10].mxu1 %v1486_v44  ;;  %v1456_v47 = vmul.f32 %v2405_v4, %v3470_v34  ;;  %v4413_v4 = vld [vmem:[#allocation17_spill] sm:$0xff] }
 0x518   : > { %2416 = vrcp.f32 %v1398_v17  ;;  %2181 = vmatprep.mubr.f32.mxu1 %v1487_v33  ;;  %v1360_v20 = vpop.permute.xlu0 %1359  ;;  %v1489_v15 = vmul.f32 %v2453_v59, %v1457_v56  ;;  %v2461_v33 = vld [vmem:[%s2688_s18 + $0xb0] sm:$0xff]  ;;  %v4414_v56 = vld [vmem:[#allocation9_spill] sm:$0xff] }
 0x519   : > { %v2407_v3 = vpop.eup %2406  ;;  %v1401_v22 = vadd.f32 %v1360_v20, %v4024_v62  ;;  %v1358_v40 = vpop.permute.xlu1 %1357  ;;  %v1488_v50 = vmul.f32 %v2454_v0, %v1456_v47  ;;  %v4415_v20 = vld [vmem:[#allocation6_spill] sm:$0xff] }
 0x51a   : > { %v2409_v43 = vpop.eup %2408  ;;  %v1400_v27 = vadd.f32 %v1358_v40, %v4027_v54  ;;  %v1459_v6 = vmul.f32 %v2407_v3, %v3479_v32  ;;  %v2464_v40 = vld [vmem:[%s2688_s18 + $0xb8] sm:$0xff] }
 0x51b   : > { %2418 = vrcp.f32 %v1401_v22  ;;  %2182 = vmatmul.mubr.f32.gmra.mrb[12].mxu1 %v1488_v50  ;;  %v1458_v34 = vmul.f32 %v2409_v43, %v3458_v55  ;;  %v4416_v43 = vld [vmem:[#allocation13_spill] sm:$0xff] }
 0x51c   : > { %2420 = vrcp.f32 %v1400_v27  ;;  %2184 = vmatprep.mubr.f32.mxu1 %v1489_v15  ;;  %v1364_v45 = vpop.permute.xlu0 %1363  ;;  %v1491_v29 = vmul.f32 %v2455_v39, %v1459_v6  ;;  %v2463_v15 = vld [vmem:[%s2688_s18 + $0xc0] sm:$0xff]  ;;  %v4417_v6 = vld [vmem:[#allocation8_spill] sm:$0xff] }
 0x51d   : > { %v2411_v62 = vpop.eup %2410  ;;  %v1403_v49 = vadd.f32 %v1364_v45, %v4034_v8  ;;  %v1362_v18 = vpop.permute.xlu1 %1361  ;;  %v1490_v41 = vmul.f32 %v2456_v25, %v1458_v34  ;;  %v4418_v45 = vld [vmem:[#allocation16_spill] sm:$0xff] }
 0x51e   : > { %v2413_v54 = vpop.eup %2412  ;;  %v1402_v32 = vadd.f32 %v1362_v18, %v4037_v5  ;;  %v1461_v12 = vmul.f32 %v2411_v62, %v3467_v36  ;;  %v2466_v18 = vld [vmem:[%s2688_s18 + $0xc8] sm:$0xff] }
 0x51f   : > { %2422 = vrcp.f32 %v1403_v49  ;;  %2185 = vmatmul.mubr.f32.gmra.mrb[14].mxu1 %v1490_v41  ;;  %v1460_v55 = vmul.f32 %v2413_v54, %v3495_v57  ;;  %v4419_v54 = vld [vmem:[#allocation12_spill] sm:$0xff] }
 0x520   : > { %2424 = vrcp.f32 %v1402_v32  ;;  %2187 = vmatprep.mubr.f32.mxu1 %v1491_v29  ;;  %v1368_v61 = vpop.permute.xlu0 %1367  ;;  %v1493_v21 = vmul.f32 %v2457_v16, %v1461_v12  ;;  %v2465_v29 = vld [vmem:[%s2688_s18 + $0xd0] sm:$0xff]  ;;  %v4420_v12 = vld [vmem:[#allocation10_spill] sm:$0xff] }
 0x521   : > { %v2415_v8 = vpop.eup %2414  ;;  %v1405_v35 = vadd.f32 %v1368_v61, %v4044_v1  ;;  %v1366_v48 = vpop.permute.xlu1 %1365  ;;  %v1492_v31 = vmul.f32 %v2458_v30, %v1460_v55  ;;  %v2467_v61 = vld [vmem:[%s2688_s18 + $0xe0] sm:$0xff]  ;;  %v4421_v30 = vld [vmem:[#allocation15_spill] sm:$0xff] }
 0x522   : > { %v2417_v5 = vpop.eup %2416  ;;  %v1404_v36 = vadd.f32 %v1366_v48, %v4047_v7  ;;  %v1463_v37 = vmul.f32 %v2415_v8, %v3504_v23  ;;  %v2468_v8 = vld [vmem:[%s2688_s18 + $0xd8] sm:$0xff] }
 0x523   : > { %2426 = vrcp.f32 %v1405_v35  ;;  %2188 = vmatmul.mubr.f32.gmra.mrb[16].mxu1 %v1492_v31  ;;  %v1462_v57 = vmul.f32 %v2417_v5, %v3482_v19  ;;  %v4412_v19 = vld [vmem:[#allocation7_spill] sm:$0xff] }
 0x524   : > { %2428 = vrcp.f32 %v1404_v36  ;;  %2190 = vmatprep.mubr.f32.mxu1 %v1493_v21  ;;  %v1372_v52 = vpop.permute.xlu0 %1371  ;;  %v1495_v11 = vmul.f32 %v2459_v53, %v1463_v37  ;;  %v4422_v5 = vld [vmem:[#allocation11_spill] sm:$0xff] }
 0x525   : > { %v2419_v1 = vpop.eup %2418  ;;  %v1407_v14 = vadd.f32 %v1372_v52, %v4054_v13  ;;  %v1370_v24 = vpop.permute.xlu1 %1369  ;;  %v1494_v46 = vmul.f32 %v2460_v26, %v1462_v57  ;;  %v2469_v37 = vld [vmem:[%s2688_s18 + $0xf0] sm:$0xff]  ;;  %v2470_v52 = vld [vmem:[%s2688_s18 + $0xe8] sm:$0xff] }
 0x526   : > { %v2421_v7 = vpop.eup %2420  ;;  %v1406_v23 = vadd.f32 %v1370_v24, %v4057_v28  ;;  %v1465_v38 = vmul.f32 %v2419_v1, %v4411_v51  ;;  %v4423_v1 = vld [vmem:[#allocation14_spill] sm:$0xff]  ;;  %v2471_v24 = vld [vmem:[%s2688_s18 + $0xf8] sm:$0xff] }
 0x527   : > { %2430 = vrcp.f32 %v1407_v14  ;;  %2191 = vmatmul.mubr.f32.gmra.mrb[18].mxu1 %v1494_v46  ;;  %v1464_v58 = vmul.f32 %v2421_v7, %v4412_v19  ;;  %v4179_v46 = vld [vmem:[%s4340_s3] ss:$0 sm:$0xff] }
 0x528   : > { %2432 = vrcp.f32 %v1406_v23  ;;  %2193 = vmatprep.mubr.f32.mxu1 %v1495_v11  ;;  %v1376_v42 = vpop.permute.xlu0 %1375  ;;  %v1497_v60 = vmul.f32 %v2461_v33, %v1465_v38  ;;  %v4184_v23 = vld [vmem:[%s4341_s4] ss:$0 sm:$0xff] }
 0x529   : > { %v2423_v13 = vpop.eup %2422  ;;  %v1409_v9 = vadd.f32 %v1376_v42, %v4064_v10  ;;  %v1374_v63 = vpop.permute.xlu1 %1373  ;;  %v1496_v44 = vmul.f32 %v2462_v2, %v1464_v58 }
 0x52a   : > { %v2425_v28 = vpop.eup %2424  ;;  %v1408_v17 = vadd.f32 %v1374_v63, %v4413_v4  ;;  %v1467_v47 = vmul.f32 %v2423_v13, %v4414_v56 }
 0x52b   : > { %2434 = vrcp.f32 %v1409_v9  ;;  %2194 = vmatmul.mubr.f32.gmra.mrb[20].mxu1 %v1496_v44  ;;  %v1466_v59 = vmul.f32 %v2425_v28, %v4415_v20 }
 0x52c   : > { %2436 = vrcp.f32 %v1408_v17  ;;  %2196 = vmatprep.mubr.f32.mxu1 %v1497_v60  ;;  %v1499_v3 = vmul.f32 %v2463_v15, %v1467_v47 }
 0x52d   : > { %v2427_v10 = vpop.eup %2426  ;;  %v1378_v22 = vpop.permute.xlu1 %1377  ;;  %v1498_v0 = vmul.f32 %v2464_v40, %v1466_v59 }
 0x52e   : > { %v2429_v50 = vpop.eup %2428  ;;  %v1410_v27 = vadd.f32 %v1378_v22, %v4416_v43  ;;  %v1469_v34 = vmul.f32 %v2427_v10, %v4417_v6 }
 0x52f   : > { %2197 = vmatmul.mubr.f32.gmra.mrb[22].mxu1 %v1498_v0  ;;  %v1468_v39 = vmul.f32 %v2429_v50, %v4418_v45 }
 0x530   : > { %2438 = vrcp.f32 %v1410_v27  ;;  %2199 = vmatprep.mubr.f32.mxu1 %v1499_v3  ;;  %v1501_v62 = vmul.f32 %v2465_v29, %v1469_v34 }
 0x531   : > { %v2431_v49 = vpop.eup %2430  ;;  %v1500_v25 = vmul.f32 %v2466_v18, %v1468_v39 }
 0x532   : > { %v2433_v41 = vpop.eup %2432  ;;  %v1471_v32 = vmul.f32 %v2431_v49, %v4419_v54 }
 0x533   : > { %2200 = vmatmul.mubr.f32.gmra.mrb[24].mxu1 %v1500_v25  ;;  %v1470_v55 = vmul.f32 %v2433_v41, %v4420_v12 }
 0x534   : > { %2202 = vmatprep.mubr.f32.mxu1 %v1501_v62  ;;  %v1503_v16 = vmul.f32 %v2467_v61, %v1471_v32 }
 0x535   : > { %v2435_v21 = vpop.eup %2434  ;;  %v1502_v35 = vmul.f32 %v2468_v8, %v1470_v55 }
 0x536   : > { %v2437_v48 = vpop.eup %2436  ;;  %v1473_v31 = vmul.f32 %v2435_v21, %v4421_v30 }
 0x537   : > { %2203 = vmatmul.mubr.f32.gmra.mrb[26].mxu1 %v1502_v35  ;;  %v1472_v36 = vmul.f32 %v2437_v48, %v4422_v5 }
 0x538   : > { %2205 = vmatprep.mubr.f32.mxu1 %v1503_v16  ;;  %v1505_v57 = vmul.f32 %v2469_v37, %v1473_v31 }
 0x539   : > { %v1504_v53 = vmul.f32 %v2470_v52, %v1472_v36 }
 0x53a   : > { %v2439_v11 = vpop.eup %2438 }
 0x53b   : > { %2206 = vmatmul.mubr.f32.gmra.mrb[28].mxu1 %v1504_v53  ;;  %v1474_v14 = vmul.f32 %v2439_v11, %v4423_v1 }
 0x53c   : > { %2208 = vmatprep.mubr.f32.mxu1 %v1505_v57 }
 0x53d   : > { %v1506_v26 = vmul.f32 %v2471_v24, %v1474_v14 }
 0x53f   : > { %2209 = vmatmul.mubr.f32.gmra.mrb[30].mxu1 %v1506_v26 }
 0x5d6   : > { %v2165_v7 = vpop.f32.mrb[0].mxu1 }
 0x5d7   : > { %v1756_v51 = vmul.f32 %v2165_v7, %v4179_v46  ;;  %v1589_v38 = vpop.f32.mrb[1].mxu1 }
 0x5d8   : > { %v1755_v19 = vmul.f32 %v4179_v46, %v1589_v38 }
 0x5d9   : > { %v1795_v58 = vadd.f32 %v4184_v23, %v1756_v51 }
 0x5da   : > { %v1794_v42 = vadd.f32 %v4184_v23, %v1755_v19  ;;  %v2168_v33 = vpop.f32.mrb[2].mxu1 }
 0x5db   : > { %v1827_v60 = vmax.f32 %v1795_v58, 0.0  ;;  %v1758_v13 = vmul.f32 %v2168_v33, %v4179_v46  ;;  %v1599_v9 = vpop.f32.mrb[3].mxu1 }
 0x5dc   : > { %v1826_v63 = vmax.f32 %v1794_v42, 0.0  ;;  %v1757_v2 = vmul.f32 %v4179_v46, %v1599_v9 }
 0x5dd   : > { %1860 = vst.msk [vmem:[%s4192_s28 + $0x8] sm:$0xff] %vm1858_vm0, %v1827_v60  ;;  %v1797_v44 = vadd.f32 %v4184_v23, %v1758_v13 }
 0x5de   : > { %1859 = vst.msk [vmem:[%s4192_s28] sm:$0xff] %vm1858_vm0, %v1826_v63  ;;  %v1796_v28 = vadd.f32 %v4184_v23, %v1757_v2  ;;  %v2171_v4 = vpop.f32.mrb[4].mxu1 }
 0x5df   : > { %v1829_v17 = vmax.f32 %v1797_v44, 0.0  ;;  %v1760_v56 = vmul.f32 %v2171_v4, %v4179_v46  ;;  %v1609_v47 = vpop.f32.mrb[5].mxu1 }
 0x5e0   : > { %v1828_v20 = vmax.f32 %v1796_v28, 0.0  ;;  %v1759_v59 = vmul.f32 %v4179_v46, %v1609_v47 }
 0x5e1   : > { %1862 = vst.msk [vmem:[%s4192_s28 + $0x18] sm:$0xff] %vm1858_vm0, %v1829_v17  ;;  %v1799_v15 = vadd.f32 %v4184_v23, %v1760_v56 }
 0x5e2   : > { %1861 = vst.msk [vmem:[%s4192_s28 + $0x10] sm:$0xff] %vm1858_vm0, %v1828_v20  ;;  %v1798_v3 = vadd.f32 %v4184_v23, %v1759_v59  ;;  %v2174_v10 = vpop.f32.mrb[6].mxu1 }
 0x5e3   : > { %v1831_v22 = vmax.f32 %v1799_v15, 0.0  ;;  %v1762_v40 = vmul.f32 %v2174_v10, %v4179_v46  ;;  %v1619_v0 = vpop.f32.mrb[7].mxu1 }
 0x5e4   : > { %v1830_v50 = vmax.f32 %v1798_v3, 0.0  ;;  %v1761_v43 = vmul.f32 %v4179_v46, %v1619_v0 }
 0x5e5   : > { %1864 = vst.msk [vmem:[%s4192_s28 + $0x28] sm:$0xff] %vm1858_vm0, %v1831_v22  ;;  %v1801_v27 = vadd.f32 %v4184_v23, %v1762_v40 }
 0x5e6   : > { %1863 = vst.msk [vmem:[%s4192_s28 + $0x20] sm:$0xff] %vm1858_vm0, %v1830_v50  ;;  %v1800_v6 = vadd.f32 %v4184_v23, %v1761_v43  ;;  %v2177_v34 = vpop.f32.mrb[8].mxu1 }
 0x5e7   : > { %v1833_v45 = vmax.f32 %v1801_v27, 0.0  ;;  %v1764_v39 = vmul.f32 %v2177_v34, %v4179_v46  ;;  %v1629_v29 = vpop.f32.mrb[9].mxu1 }
 0x5e8   : > { %v1832_v62 = vmax.f32 %v1800_v6, 0.0  ;;  %v1763_v49 = vmul.f32 %v4179_v46, %v1629_v29 }
 0x5e9   : > { %1866 = vst.msk [vmem:[%s4192_s28 + $0x38] sm:$0xff] %vm1858_vm0, %v1833_v45  ;;  %v1803_v18 = vadd.f32 %v4184_v23, %v1764_v39 }
 0x5ea   : > { %1865 = vst.msk [vmem:[%s4192_s28 + $0x30] sm:$0xff] %vm1858_vm0, %v1832_v62  ;;  %v1802_v25 = vadd.f32 %v4184_v23, %v1763_v49  ;;  %v2180_v41 = vpop.f32.mrb[10].mxu1 }
 0x5eb   : > { %v1835_v54 = vmax.f32 %v1803_v18, 0.0  ;;  %v1766_v32 = vmul.f32 %v2180_v41, %v4179_v46  ;;  %v1639_v12 = vpop.f32.mrb[11].mxu1 }
 0x5ec   : > { %v1834_v55 = vmax.f32 %v1802_v25, 0.0  ;;  %v1765_v61 = vmul.f32 %v4179_v46, %v1639_v12 }
 0x5ed   : > { %1868 = vst.msk [vmem:[%s4192_s28 + $0x48] sm:$0xff] %vm1858_vm0, %v1835_v54  ;;  %v1805_v16 = vadd.f32 %v4184_v23, %v1766_v32 }
 0x5ee   : > { %1867 = vst.msk [vmem:[%s4192_s28 + $0x40] sm:$0xff] %vm1858_vm0, %v1834_v55  ;;  %v1804_v21 = vadd.f32 %v4184_v23, %v1765_v61  ;;  %v2183_v8 = vpop.f32.mrb[12].mxu1 }
 0x5ef   : > { %v1837_v35 = vmax.f32 %v1805_v16, 0.0  ;;  %v1768_v48 = vmul.f32 %v2183_v8, %v4179_v46  ;;  %v1649_v30 = vpop.f32.mrb[13].mxu1 }
 0x5f0   : > { %v1836_v31 = vmax.f32 %v1804_v21, 0.0  ;;  %v1767_v5 = vmul.f32 %v4179_v46, %v1649_v30 }
 0x5f1   : > { %1870 = vst.msk [vmem:[%s4192_s28 + $0x58] sm:$0xff] %vm1858_vm0, %v1837_v35  ;;  %v1807_v36 = vadd.f32 %v4184_v23, %v1768_v48 }
 0x5f2   : > { %1869 = vst.msk [vmem:[%s4192_s28 + $0x50] sm:$0xff] %vm1858_vm0, %v1836_v31  ;;  %v1806_v37 = vadd.f32 %v4184_v23, %v1767_v5  ;;  %v2186_v57 = vpop.f32.mrb[14].mxu1 }
 0x5f3   : > { %v1839_v52 = vmax.f32 %v1807_v36, 0.0  ;;  %v1770_v53 = vmul.f32 %v2186_v57, %v4179_v46  ;;  %v1659_v11 = vpop.f32.mrb[15].mxu1 }
 0x5f4   : > { %v1838_v1 = vmax.f32 %v1806_v37, 0.0  ;;  %v1769_v14 = vmul.f32 %v4179_v46, %v1659_v11 }
 0x5f5   : > { %1872 = vst.msk [vmem:[%s4192_s28 + $0x68] sm:$0xff] %vm1858_vm0, %v1839_v52  ;;  %v1809_v24 = vadd.f32 %v4184_v23, %v1770_v53 }
 0x5f6   : > { %1871 = vst.msk [vmem:[%s4192_s28 + $0x60] sm:$0xff] %vm1858_vm0, %v1838_v1  ;;  %v1808_v26 = vadd.f32 %v4184_v23, %v1769_v14  ;;  %v2189_v7 = vpop.f32.mrb[16].mxu1 }
 0x5f7   : > { %v1841_v51 = vmax.f32 %v1809_v24, 0.0  ;;  %v1772_v38 = vmul.f32 %v2189_v7, %v4179_v46  ;;  %v1669_v19 = vpop.f32.mrb[17].mxu1 }
 0x5f8   : > { %v1840_v58 = vmax.f32 %v1808_v26, 0.0  ;;  %v1771_v42 = vmul.f32 %v4179_v46, %v1669_v19 }
 0x5f9   : > { %1874 = vst.msk [vmem:[%s4192_s28 + $0x78] sm:$0xff] %vm1858_vm0, %v1841_v51  ;;  %v1811_v33 = vadd.f32 %v4184_v23, %v1772_v38 }
 0x5fa   : > { %1873 = vst.msk [vmem:[%s4192_s28 + $0x70] sm:$0xff] %vm1858_vm0, %v1840_v58  ;;  %v1810_v60 = vadd.f32 %v4184_v23, %v1771_v42  ;;  %v2192_v13 = vpop.f32.mrb[18].mxu1 }
 0x5fb   : > { %v1843_v9 = vmax.f32 %v1811_v33, 0.0  ;;  %v1774_v63 = vmul.f32 %v2192_v13, %v4179_v46  ;;  %v1679_v2 = vpop.f32.mrb[19].mxu1 }
 0x5fc   : > { %v1842_v44 = vmax.f32 %v1810_v60, 0.0  ;;  %v1773_v28 = vmul.f32 %v4179_v46, %v1679_v2 }
 0x5fd   : > { %1876 = vst.msk [vmem:[%s4192_s28 + $0x88] sm:$0xff] %vm1858_vm0, %v1843_v9  ;;  %v1813_v4 = vadd.f32 %v4184_v23, %v1774_v63 }
 0x5fe   : > { %1875 = vst.msk [vmem:[%s4192_s28 + $0x80] sm:$0xff] %vm1858_vm0, %v1842_v44  ;;  %v1812_v17 = vadd.f32 %v4184_v23, %v1773_v28  ;;  %v2195_v56 = vpop.f32.mrb[20].mxu1 }
 0x5ff   : > { %v1845_v47 = vmax.f32 %v1813_v4, 0.0  ;;  %v1776_v20 = vmul.f32 %v2195_v56, %v4179_v46  ;;  %v1689_v59 = vpop.f32.mrb[21].mxu1 }
 0x600   : > { %v1844_v15 = vmax.f32 %v1812_v17, 0.0  ;;  %v1775_v3 = vmul.f32 %v4179_v46, %v1689_v59 }
 0x601   : > { %1878 = vst.msk [vmem:[%s4192_s28 + $0x98] sm:$0xff] %vm1858_vm0, %v1845_v47  ;;  %v1815_v10 = vadd.f32 %v4184_v23, %v1776_v20 }
 0x602   : > { %1877 = vst.msk [vmem:[%s4192_s28 + $0x90] sm:$0xff] %vm1858_vm0, %v1844_v15  ;;  %v1814_v22 = vadd.f32 %v4184_v23, %v1775_v3  ;;  %v2198_v40 = vpop.f32.mrb[22].mxu1 }
 0x603   : > { %v1847_v0 = vmax.f32 %v1815_v10, 0.0  ;;  %v1778_v50 = vmul.f32 %v2198_v40, %v4179_v46  ;;  %v1699_v43 = vpop.f32.mrb[23].mxu1 }
 0x604   : > { %v1846_v27 = vmax.f32 %v1814_v22, 0.0  ;;  %v1777_v6 = vmul.f32 %v4179_v46, %v1699_v43 }
 0x605   : > { %1880 = vst.msk [vmem:[%s4192_s28 + $0xa8] sm:$0xff] %vm1858_vm0, %v1847_v0  ;;  %v1817_v34 = vadd.f32 %v4184_v23, %v1778_v50 }
 0x606   : > { %1879 = vst.msk [vmem:[%s4192_s28 + $0xa0] sm:$0xff] %vm1858_vm0, %v1846_v27  ;;  %v1816_v45 = vadd.f32 %v4184_v23, %v1777_v6  ;;  %v2201_v39 = vpop.f32.mrb[24].mxu1 }
 0x607   : > { %v1849_v29 = vmax.f32 %v1817_v34, 0.0  ;;  %v1780_v62 = vmul.f32 %v2201_v39, %v4179_v46  ;;  %v1709_v49 = vpop.f32.mrb[25].mxu1 }
 0x608   : > { %v1848_v18 = vmax.f32 %v1816_v45, 0.0  ;;  %v1779_v25 = vmul.f32 %v4179_v46, %v1709_v49 }
 0x609   : > { %1882 = vst.msk [vmem:[%s4192_s28 + $0xb8] sm:$0xff] %vm1858_vm0, %v1849_v29  ;;  %v1819_v41 = vadd.f32 %v4184_v23, %v1780_v62 }
 0x60a   : > { %1881 = vst.msk [vmem:[%s4192_s28 + $0xb0] sm:$0xff] %vm1858_vm0, %v1848_v18  ;;  %v1818_v54 = vadd.f32 %v4184_v23, %v1779_v25  ;;  %v2204_v32 = vpop.f32.mrb[26].mxu1 }
 0x60b   : > { %v1851_v12 = vmax.f32 %v1819_v41, 0.0  ;;  %v1782_v55 = vmul.f32 %v2204_v32, %v4179_v46  ;;  %v1719_v61 = vpop.f32.mrb[27].mxu1 }
 0x60c   : > { %v1850_v16 = vmax.f32 %v1818_v54, 0.0  ;;  %v1781_v21 = vmul.f32 %v4179_v46, %v1719_v61 }
 0x60d   : > { %1884 = vst.msk [vmem:[%s4192_s28 + $0xc8] sm:$0xff] %vm1858_vm0, %v1851_v12  ;;  %v1821_v8 = vadd.f32 %v4184_v23, %v1782_v55 }
 0x60e   : > { %1883 = vst.msk [vmem:[%s4192_s28 + $0xc0] sm:$0xff] %vm1858_vm0, %v1850_v16  ;;  %v1820_v35 = vadd.f32 %v4184_v23, %v1781_v21  ;;  %v2207_v48 = vpop.f32.mrb[28].mxu1 }
 0x60f   : > { %v1853_v30 = vmax.f32 %v1821_v8, 0.0  ;;  %v1784_v31 = vmul.f32 %v2207_v48, %v4179_v46  ;;  %v1729_v5 = vpop.f32.mrb[29].mxu1 }
 0x610   : > { %v1852_v36 = vmax.f32 %v1820_v35, 0.0  ;;  %v1783_v37 = vmul.f32 %v4179_v46, %v1729_v5 }
 0x611   : > { %1886 = vst.msk [vmem:[%s4192_s28 + $0xd8] sm:$0xff] %vm1858_vm0, %v1853_v30  ;;  %v1823_v57 = vadd.f32 %v4184_v23, %v1784_v31 }
 0x612   : > { %1885 = vst.msk [vmem:[%s4192_s28 + $0xd0] sm:$0xff] %vm1858_vm0, %v1852_v36  ;;  %v1822_v52 = vadd.f32 %v4184_v23, %v1783_v37  ;;  %v2210_v53 = vpop.f32.mrb[30].mxu1 }
 0x613   : > { %v1855_v11 = vmax.f32 %v1823_v57, 0.0  ;;  %v1786_v1 = vmul.f32 %v2210_v53, %v4179_v46  ;;  %v1739_v14 = vpop.f32.mrb[31].mxu1 }
 0x614   : > { %v1854_v24 = vmax.f32 %v1822_v52, 0.0  ;;  %v1785_v26 = vmul.f32 %v4179_v46, %v1739_v14 }
 0x615   : > { %1888 = vst.msk [vmem:[%s4192_s28 + $0xe8] sm:$0xff] %vm1858_vm0, %v1855_v11  ;;  %v1825_v7 = vadd.f32 %v4184_v23, %v1786_v1 }
 0x616   : > { %1887 = vst.msk [vmem:[%s4192_s28 + $0xe0] sm:$0xff] %vm1858_vm0, %v1854_v24  ;;  %v1824_v51 = vadd.f32 %v4184_v23, %v1785_v26 }
 0x617   : > { %v1857_v38 = vmax.f32 %v1825_v7, 0.0 }
 0x618   : > { %v1856_v19 = vmax.f32 %v1824_v51, 0.0 }
 0x619   : > { %1890 = vst.msk [vmem:[%s4192_s28 + $0xf8] sm:$0xff] %vm1858_vm0, %v1857_v38 }
 0x61a   : > { %1889 = vst.msk [vmem:[%s4192_s28 + $0xf0] sm:$0xff] %vm1858_vm0, %v1856_v19 }
 0x61b PF: > { %s18_s23 = sadd.s32 1, %s2552_s23   ;;  %s4424_s18 = smov %s2536_s19 }
 0x61c   : > { %p15_p9 = scmp.ge.s32.totalorder %s18_s23, 4   ;;  %s4425_s19 = smov %s2540_s20 }
 0x61d   : > { %s4426_s20 = smov %s2640_s30  ;;  %s4427_s21 = smov %s2548_s22 }
 0x61e   : > { %s4428_s22 = smov %s4430_s25  ;;  %17 = sbr.rel (!%p15_p9) target bundleno = 4 (0x4), region = 80 }
 0x625   :  { %1921 = vsyncpa [#allocation3], 1 }
 0x626   :  { %1923 = vsyncpa [#allocation3 + $0x1], 1 }

</bundles_post_ra>
